<compile_context>
chip_gen: v6e
topology: v6e:2x2x1
jax: 0.10.0
libtpu: 0.0.40
codegen_flags: <defaults>
</compile_context>

<pallas_src>
import functools

import jax
import jax.numpy as jnp
import numpy as np
from jax import lax
from jax.experimental import pallas as pl
from jax.experimental.pallas import tpu as pltpu


def _convlstm_kernel(x_ref, h_ref, c_ref, w_ref, b_ref,
                     h_out_ref, c_out_ref, acc_ref,
                     *, H, W, K, P, C_in, HID):
    """One batch element per grid step.  Spatial dims flattened into lanes.

    x_ref    : (1, C_in, H*W)        input slab (f32)
    h_ref    : (1, HID,  H*W)        current hidden state (f32)
    c_ref    : (1, HID,  H*W)        current cell state (f32)
    w_ref    : (K, 4*HID, K*C_tot)   bf16 conv taps, w[dy, o, dx*C_tot + c]
    b_ref    : (4*HID, 1)            conv bias as a column (f32)
    h_out_ref: (1, HID, H*W)
    c_out_ref: (1, HID, H*W)
    acc_ref  : (4*HID, H*W)          f32 VMEM accumulator
    """
    HW = H * W

    # Lane coordinate maps (x minor, y major) for the "same"-padding masks.
    lane = lax.broadcasted_iota(jnp.int32, (1, HW), 1)
    if (W & (W - 1)) == 0:                      # power of two: avoid div/rem
        x_idx = lane & (W - 1)
        y_idx = lane >> (W.bit_length() - 1)
    else:
        x_idx = lane % W
        y_idx = lane // W

    # combined = cat([x, h]) along channels (sublanes); spatial stays in lanes.
    comb = jnp.concatenate([x_ref[0], h_ref[0]], axis=0)       # (C_tot, HW) f32

    def shift_lanes(a, s):
        # out[:, l] = a[:, (l + s) mod HW]  (static s; boundary lanes masked below)
        if s == 0:
            return a
        return jnp.concatenate([a[:, s:], a[:, :s]], axis=1)

    def tap(dy, dx):
        s = (dy - P) * W + (dx - P)
        t = shift_lanes(comb, s)
        conds = []
        if dx < P:
            conds.append(x_idx >= (P - dx))
        if dx > P:
            conds.append(x_idx < (W - (dx - P)))
        if dy < P:
            conds.append(y_idx >= (P - dy))
        if dy > P:
            conds.append(y_idx < (H - (dy - P)))
        if conds:
            m = functools.reduce(jnp.logical_and, conds)        # (1, HW) bool
            t = jnp.where(m, t, jnp.zeros_like(t))
        return t

    # f32 accumulator in VMEM, seeded with the conv bias (per output channel
    # == per sublane, broadcast across the spatial/lane axis).
    acc_ref[...] = jnp.broadcast_to(b_ref[...], acc_ref.shape)

    # Conv as K MXU matmuls: dx taps folded into the contraction axis (depth
    # K*C_tot); the dy tap selects a weight slab (pure addressing).
    for dy in range(K):
        slab = jnp.concatenate([tap(dy, dx) for dx in range(K)], axis=0)
        acc_ref[...] += jnp.dot(w_ref[dy], slab.astype(jnp.bfloat16),
                                preferred_element_type=jnp.float32)

    # ---- gates + LSTM state update (f32, lane-dense, sublane-sliced gates) ----
    gates = acc_ref[...]                                        # (4*HID, HW)
    cc_i = gates[0 * HID:1 * HID]
    cc_f = gates[1 * HID:2 * HID]
    cc_o = gates[2 * HID:3 * HID]
    cc_g = gates[3 * HID:4 * HID]

    i = jax.nn.sigmoid(cc_i)
    f = jax.nn.sigmoid(cc_f)
    o = jax.nn.sigmoid(cc_o)
    g = jnp.tanh(cc_g)

    c_next = f * c_ref[0] + i * g                               # (HID, HW)
    h_next = o * jnp.tanh(c_next)

    c_out_ref[0] = c_next.astype(c_out_ref.dtype)
    h_out_ref[0] = h_next.astype(h_out_ref.dtype)


def conv_lstm_cell_2d(x_nchw, h_nchw, c_nchw, weight_oihw, bias, kernel_size):
    """ConvLSTMCell2D.forward. Inputs/outputs use the PyTorch NCHW convention."""
    B, C_in, H, W = x_nchw.shape
    HID = h_nchw.shape[1]
    K = kernel_size
    P = K // 2
    C_tot = C_in + HID
    HW = H * W

    # Flatten spatial dims into the lane axis -- free reshapes, no transposes.
    x = x_nchw.reshape(B, C_in, HW)
    h = h_nchw.reshape(B, HID, HW)
    c = c_nchw.reshape(B, HID, HW)

    # Repack conv weights once for the transposed matmul:
    #   w_packed[dy, o, dx*C_tot + c] = weight[o, c, dy, dx]   (bf16 for the MXU)
    # Input-channel order c is torch.cat([x, h], dim=1), matching the in-kernel
    # sublane concat.
    w_packed = jnp.transpose(weight_oihw, (2, 0, 3, 1)).reshape(K, 4 * HID, K * C_tot)
    w_packed = w_packed.astype(jnp.bfloat16)
    b_col = bias.reshape(4 * HID, 1).astype(jnp.float32)

    kernel = functools.partial(_convlstm_kernel, H=H, W=W, K=K, P=P,
                               C_in=C_in, HID=HID)

    # TODO(synk): for a full sequence, keep h/c resident in VMEM across a
    # T-step grid (single pallas_call over time) instead of round-tripping the
    # state through HBM every step.
    h_next, c_next = pl.pallas_call(
        kernel,
        out_shape=(jax.ShapeDtypeStruct((B, HID, HW), x.dtype),
                   jax.ShapeDtypeStruct((B, HID, HW), x.dtype)),
        grid_spec=pltpu.PrefetchScalarGridSpec(
            num_scalar_prefetch=0,
            grid=(B,),
            in_specs=[
                pl.BlockSpec((1, C_in, HW), lambda b: (b, 0, 0)),
                pl.BlockSpec((1, HID, HW), lambda b: (b, 0, 0)),
                pl.BlockSpec((1, HID, HW), lambda b: (b, 0, 0)),
                pl.BlockSpec((K, 4 * HID, K * C_tot), lambda b: (0, 0, 0)),
                pl.BlockSpec((4 * HID, 1), lambda b: (0, 0)),
            ],
            out_specs=[
                pl.BlockSpec((1, HID, HW), lambda b: (b, 0, 0)),
                pl.BlockSpec((1, HID, HW), lambda b: (b, 0, 0)),
            ],
            scratch_shapes=[
                pltpu.VMEM((4 * HID, HW), jnp.float32),
            ]),
        compiler_params=pltpu.CompilerParams(
            dimension_semantics=("parallel",)),
    )(x, h, c, w_packed, b_col)

    # Free reshapes back to NCHW (no transposes needed in this orientation).
    return h_next.reshape(B, HID, H, W), c_next.reshape(B, HID, H, W)


def _reference(x_nchw, h_nchw, c_nchw, weight_oihw, bias, kernel_size):
    """Pure-JAX f32 reference matching the PyTorch forward exactly (NCHW)."""
    P = kernel_size // 2
    combined = jnp.concatenate([x_nchw, h_nchw], axis=1)
    conv = lax.conv_general_dilated(
        combined, weight_oihw, window_strides=(1, 1),
        padding=[(P, P), (P, P)],
        dimension_numbers=("NCHW", "OIHW", "NCHW"))
    conv = conv + bias[None, :, None, None]
    cc_i, cc_f, cc_o, cc_g = jnp.split(conv, 4, axis=1)
    i = jax.nn.sigmoid(cc_i)
    f = jax.nn.sigmoid(cc_f)
    o = jax.nn.sigmoid(cc_o)
    g = jnp.tanh(cc_g)
    c_next = f * c_nchw + i * g
    h_next = o * jnp.tanh(c_next)
    return h_next, c_next


if __name__ == "__main__":
    B, C_IN, HID, H, W, K = 2, 4, 32, 16, 16, 3
    C_TOT = C_IN + HID

    key = jax.random.PRNGKey(0)
    kx, kh, kc, kw, kb = jax.random.split(key, 5)

    x = jax.random.normal(kx, (B, C_IN, H, W), jnp.float32)
    h0 = jax.random.normal(kh, (B, HID, H, W), jnp.float32)
    c0 = jax.random.normal(kc, (B, HID, H, W), jnp.float32)

    # Deterministic synthetic conv parameters (nn.Conv2d shapes / init range).
    fan_in = C_TOT * K * K
    bound = 1.0 / np.sqrt(fan_in)
    weight = jax.random.uniform(kw, (4 * HID, C_TOT, K, K), jnp.float32,
                                minval=-bound, maxval=bound)
    bias = jax.random.uniform(kb, (4 * HID,), jnp.float32,
                              minval=-bound, maxval=bound)

    h_next, c_next = conv_lstm_cell_2d(x, h0, c0, weight, bias, K)
    jax.block_until_ready((h_next, c_next))

    h_ref, c_ref = _reference(x, h0, c0, weight, bias, K)
    # bf16 MXU operands (f32 accumulation) => loosen tolerances vs the f32 ref.
    np.testing.assert_allclose(np.asarray(h_next), np.asarray(h_ref),
                               rtol=3e-2, atol=3e-2)
    np.testing.assert_allclose(np.asarray(c_next), np.asarray(c_ref),
                               rtol=3e-2, atol=3e-2)

    print("KERNEL_OK")
</pallas_src>

<mosaic_0001>
module attributes {stable_mosaic.version = 11 : i64} {
  func.func @_convlstm_kernel(%arg0: i32, %arg1: memref<1x4x256xf32, #tpu.memory_space<vmem>>, %arg2: memref<1x32x256xf32, #tpu.memory_space<vmem>>, %arg3: memref<1x32x256xf32, #tpu.memory_space<vmem>>, %arg4: memref<3x128x108xbf16, #tpu.memory_space<vmem>>, %arg5: memref<128x1xf32, #tpu.memory_space<vmem>>, %arg6: memref<1x32x256xf32, #tpu.memory_space<vmem>>, %arg7: memref<1x32x256xf32, #tpu.memory_space<vmem>>, %arg8: memref<128x256xf32, #tpu.memory_space<vmem>>) attributes {dimension_semantics = [#tpu.dimension_semantics<parallel>], iteration_bounds = array<i64: 2>, scalar_prefetch = 0 : i64, scratch_operands = 1 : i64, tpu.core_type = #tpu.core_type<tc>, window_params = [{transform_indices = @transform_0, window_bounds = array<i64: 1, 4, 256>}, {transform_indices = @transform_1, window_bounds = array<i64: 1, 32, 256>}, {transform_indices = @transform_2, window_bounds = array<i64: 1, 32, 256>}, {pipeline_mode = #tpu.pipeline_mode<synchronous>, transform_indices = @transform_3, window_bounds = array<i64: 3, 128, 108>}, {pipeline_mode = #tpu.pipeline_mode<synchronous>, transform_indices = @transform_4, window_bounds = array<i64: 128, 1>}, {transform_indices = @transform_5, window_bounds = array<i64: 1, 32, 256>}, {transform_indices = @transform_6, window_bounds = array<i64: 1, 32, 256>}]} {
    %0 = tpu.iota {dimensions = array<i32: 1>} : vector<1x256xi32>
    %c15_i32 = arith.constant 15 : i32
    %1 = vector.broadcast %c15_i32 : i32 to vector<1x256xi32>
    %2 = arith.andi %0, %1 : vector<1x256xi32>
    %c4_i32 = arith.constant 4 : i32
    %3 = vector.broadcast %c4_i32 : i32 to vector<1x256xi32>
    %4 = arith.shrsi %0, %3 : vector<1x256xi32>
    %c0 = arith.constant 0 : index
    %c0_0 = arith.constant 0 : index
    %c0_1 = arith.constant 0 : index
    %5 = vector.load %arg1[%c0, %c0_0, %c0_1] : memref<1x4x256xf32, #tpu.memory_space<vmem>>, vector<1x4x256xf32>
    %6 = vector.shape_cast %5 : vector<1x4x256xf32> to vector<4x256xf32>
    %c0_2 = arith.constant 0 : index
    %c0_3 = arith.constant 0 : index
    %c0_4 = arith.constant 0 : index
    %7 = vector.load %arg2[%c0_2, %c0_3, %c0_4] : memref<1x32x256xf32, #tpu.memory_space<vmem>>, vector<1x32x256xf32>
    %8 = vector.shape_cast %7 : vector<1x32x256xf32> to vector<32x256xf32>
    %9 = tpu.concatenate %6, %8 in 0 : vector<4x256xf32>, vector<32x256xf32> -> vector<36x256xf32>
    %c0_5 = arith.constant 0 : index
    %c0_6 = arith.constant 0 : index
    %10 = vector.load %arg5[%c0_5, %c0_6] : memref<128x1xf32, #tpu.memory_space<vmem>>, vector<128x1xf32>
    %11 = vector.shape_cast %10 : vector<128x1xf32> to vector<128x1xf32>
    %12 = vector.broadcast %11 : vector<128x1xf32> to vector<128x256xf32>
    %c0_7 = arith.constant 0 : index
    %c0_8 = arith.constant 0 : index
    %13 = vector.load %arg8[%c0_7, %c0_8] : memref<128x256xf32, #tpu.memory_space<vmem>>, vector<128x256xf32>
    tpu.vector_store %arg8[%c0_7, %c0_8], %12 {strides = array<i32>} : memref<128x256xf32, #tpu.memory_space<vmem>>, vector<128x256xf32>,
    %14 = vector.extract_strided_slice %9 {offsets = [0, 239], sizes = [36, 17], strides = [1, 1]} : vector<36x256xf32> to vector<36x17xf32>
    %15 = vector.extract_strided_slice %9 {offsets = [0, 0], sizes = [36, 239], strides = [1, 1]} : vector<36x256xf32> to vector<36x239xf32>
    %16 = tpu.concatenate %14, %15 in 1 : vector<36x17xf32>, vector<36x239xf32> -> vector<36x256xf32>
    %c1_i32 = arith.constant 1 : i32
    %17 = vector.broadcast %c1_i32 : i32 to vector<1x256xi32>
    %18 = arith.cmpi sge, %2, %17 : vector<1x256xi32>
    %c1_i32_9 = arith.constant 1 : i32
    %19 = vector.broadcast %c1_i32_9 : i32 to vector<1x256xi32>
    %20 = arith.cmpi sge, %4, %19 : vector<1x256xi32>
    %21 = arith.andi %18, %20 : vector<1x256xi1>
    %cst = arith.constant 0.000000e+00 : f32
    %22 = vector.broadcast %cst : f32 to vector<36x256xf32>
    %23 = vector.shape_cast %21 : vector<1x256xi1> to vector<1x256xi1>
    %24 = vector.broadcast %23 : vector<1x256xi1> to vector<36x256xi1>
    %25 = arith.select %24, %16, %22 : vector<36x256xi1>, vector<36x256xf32>
    %26 = vector.extract_strided_slice %9 {offsets = [0, 240], sizes = [36, 16], strides = [1, 1]} : vector<36x256xf32> to vector<36x16xf32>
    %27 = vector.extract_strided_slice %9 {offsets = [0, 0], sizes = [36, 240], strides = [1, 1]} : vector<36x256xf32> to vector<36x240xf32>
    %28 = tpu.concatenate %26, %27 in 1 : vector<36x16xf32>, vector<36x240xf32> -> vector<36x256xf32>
    %c1_i32_10 = arith.constant 1 : i32
    %29 = vector.broadcast %c1_i32_10 : i32 to vector<1x256xi32>
    %30 = arith.cmpi sge, %4, %29 : vector<1x256xi32>
    %cst_11 = arith.constant 0.000000e+00 : f32
    %31 = vector.broadcast %cst_11 : f32 to vector<36x256xf32>
    %32 = vector.shape_cast %30 : vector<1x256xi1> to vector<1x256xi1>
    %33 = vector.broadcast %32 : vector<1x256xi1> to vector<36x256xi1>
    %34 = arith.select %33, %28, %31 : vector<36x256xi1>, vector<36x256xf32>
    %35 = vector.extract_strided_slice %9 {offsets = [0, 241], sizes = [36, 15], strides = [1, 1]} : vector<36x256xf32> to vector<36x15xf32>
    %36 = vector.extract_strided_slice %9 {offsets = [0, 0], sizes = [36, 241], strides = [1, 1]} : vector<36x256xf32> to vector<36x241xf32>
    %37 = tpu.concatenate %35, %36 in 1 : vector<36x15xf32>, vector<36x241xf32> -> vector<36x256xf32>
    %c15_i32_12 = arith.constant 15 : i32
    %38 = vector.broadcast %c15_i32_12 : i32 to vector<1x256xi32>
    %39 = arith.cmpi slt, %2, %38 : vector<1x256xi32>
    %c1_i32_13 = arith.constant 1 : i32
    %40 = vector.broadcast %c1_i32_13 : i32 to vector<1x256xi32>
    %41 = arith.cmpi sge, %4, %40 : vector<1x256xi32>
    %42 = arith.andi %39, %41 : vector<1x256xi1>
    %cst_14 = arith.constant 0.000000e+00 : f32
    %43 = vector.broadcast %cst_14 : f32 to vector<36x256xf32>
    %44 = vector.shape_cast %42 : vector<1x256xi1> to vector<1x256xi1>
    %45 = vector.broadcast %44 : vector<1x256xi1> to vector<36x256xi1>
    %46 = arith.select %45, %37, %43 : vector<36x256xi1>, vector<36x256xf32>
    %47 = tpu.concatenate %25, %34, %46 in 0 : vector<36x256xf32>, vector<36x256xf32>, vector<36x256xf32> -> vector<108x256xf32>
    %c0_15 = arith.constant 0 : index
    %c0_16 = arith.constant 0 : index
    %48 = vector.load %arg8[%c0_15, %c0_16] : memref<128x256xf32, #tpu.memory_space<vmem>>, vector<128x256xf32>
    %c0_17 = arith.constant 0 : index
    %c0_18 = arith.constant 0 : index
    %c0_19 = arith.constant 0 : index
    %49 = vector.load %arg4[%c0_17, %c0_18, %c0_19] : memref<3x128x108xbf16, #tpu.memory_space<vmem>>, vector<1x128x108xbf16>
    %50 = vector.shape_cast %49 : vector<1x128x108xbf16> to vector<128x108xbf16>
    %51 = arith.truncf %47 : vector<108x256xf32> to vector<108x256xbf16>
    %cst_20 = arith.constant dense<0.000000e+00> : vector<128x256xf32>
    %52 = tpu.matmul %50, %51, %cst_20 {dimension_numbers = #tpu.dot_dimension_numbers<[1], [0], [0], [1], [0, 0, 1, 1], [], []>} : vector<128x108xbf16>, vector<108x256xbf16>, vector<128x256xf32> -> vector<128x256xf32>
    %53 = arith.addf %48, %52 : vector<128x256xf32>
    %c0_21 = arith.constant 0 : index
    %c0_22 = arith.constant 0 : index
    %54 = vector.load %arg8[%c0_21, %c0_22] : memref<128x256xf32, #tpu.memory_space<vmem>>, vector<128x256xf32>
    tpu.vector_store %arg8[%c0_21, %c0_22], %53 {strides = array<i32>} : memref<128x256xf32, #tpu.memory_space<vmem>>, vector<128x256xf32>,
    %55 = vector.extract_strided_slice %9 {offsets = [0, 255], sizes = [36, 1], strides = [1, 1]} : vector<36x256xf32> to vector<36x1xf32>
    %56 = vector.extract_strided_slice %9 {offsets = [0, 0], sizes = [36, 255], strides = [1, 1]} : vector<36x256xf32> to vector<36x255xf32>
    %57 = tpu.concatenate %55, %56 in 1 : vector<36x1xf32>, vector<36x255xf32> -> vector<36x256xf32>
    %c1_i32_23 = arith.constant 1 : i32
    %58 = vector.broadcast %c1_i32_23 : i32 to vector<1x256xi32>
    %59 = arith.cmpi sge, %2, %58 : vector<1x256xi32>
    %cst_24 = arith.constant 0.000000e+00 : f32
    %60 = vector.broadcast %cst_24 : f32 to vector<36x256xf32>
    %61 = vector.shape_cast %59 : vector<1x256xi1> to vector<1x256xi1>
    %62 = vector.broadcast %61 : vector<1x256xi1> to vector<36x256xi1>
    %63 = arith.select %62, %57, %60 : vector<36x256xi1>, vector<36x256xf32>
    %64 = vector.extract_strided_slice %9 {offsets = [0, 1], sizes = [36, 255], strides = [1, 1]} : vector<36x256xf32> to vector<36x255xf32>
    %65 = vector.extract_strided_slice %9 {offsets = [0, 0], sizes = [36, 1], strides = [1, 1]} : vector<36x256xf32> to vector<36x1xf32>
    %66 = tpu.concatenate %64, %65 in 1 : vector<36x255xf32>, vector<36x1xf32> -> vector<36x256xf32>
    %c15_i32_25 = arith.constant 15 : i32
    %67 = vector.broadcast %c15_i32_25 : i32 to vector<1x256xi32>
    %68 = arith.cmpi slt, %2, %67 : vector<1x256xi32>
    %cst_26 = arith.constant 0.000000e+00 : f32
    %69 = vector.broadcast %cst_26 : f32 to vector<36x256xf32>
    %70 = vector.shape_cast %68 : vector<1x256xi1> to vector<1x256xi1>
    %71 = vector.broadcast %70 : vector<1x256xi1> to vector<36x256xi1>
    %72 = arith.select %71, %66, %69 : vector<36x256xi1>, vector<36x256xf32>
    %73 = tpu.concatenate %63, %9, %72 in 0 : vector<36x256xf32>, vector<36x256xf32>, vector<36x256xf32> -> vector<108x256xf32>
    %c0_27 = arith.constant 0 : index
    %c0_28 = arith.constant 0 : index
    %74 = vector.load %arg8[%c0_27, %c0_28] : memref<128x256xf32, #tpu.memory_space<vmem>>, vector<128x256xf32>
    %c1 = arith.constant 1 : index
    %c0_29 = arith.constant 0 : index
    %c0_30 = arith.constant 0 : index
    %75 = vector.load %arg4[%c1, %c0_29, %c0_30] : memref<3x128x108xbf16, #tpu.memory_space<vmem>>, vector<1x128x108xbf16>
    %76 = vector.shape_cast %75 : vector<1x128x108xbf16> to vector<128x108xbf16>
    %77 = arith.truncf %73 : vector<108x256xf32> to vector<108x256xbf16>
    %cst_31 = arith.constant dense<0.000000e+00> : vector<128x256xf32>
    %78 = tpu.matmul %76, %77, %cst_31 {dimension_numbers = #tpu.dot_dimension_numbers<[1], [0], [0], [1], [0, 0, 1, 1], [], []>} : vector<128x108xbf16>, vector<108x256xbf16>, vector<128x256xf32> -> vector<128x256xf32>
    %79 = arith.addf %74, %78 : vector<128x256xf32>
    %c0_32 = arith.constant 0 : index
    %c0_33 = arith.constant 0 : index
    %80 = vector.load %arg8[%c0_32, %c0_33] : memref<128x256xf32, #tpu.memory_space<vmem>>, vector<128x256xf32>
    tpu.vector_store %arg8[%c0_32, %c0_33], %79 {strides = array<i32>} : memref<128x256xf32, #tpu.memory_space<vmem>>, vector<128x256xf32>,
    %81 = vector.extract_strided_slice %9 {offsets = [0, 15], sizes = [36, 241], strides = [1, 1]} : vector<36x256xf32> to vector<36x241xf32>
    %82 = vector.extract_strided_slice %9 {offsets = [0, 0], sizes = [36, 15], strides = [1, 1]} : vector<36x256xf32> to vector<36x15xf32>
    %83 = tpu.concatenate %81, %82 in 1 : vector<36x241xf32>, vector<36x15xf32> -> vector<36x256xf32>
    %c1_i32_34 = arith.constant 1 : i32
    %84 = vector.broadcast %c1_i32_34 : i32 to vector<1x256xi32>
    %85 = arith.cmpi sge, %2, %84 : vector<1x256xi32>
    %c15_i32_35 = arith.constant 15 : i32
    %86 = vector.broadcast %c15_i32_35 : i32 to vector<1x256xi32>
    %87 = arith.cmpi slt, %4, %86 : vector<1x256xi32>
    %88 = arith.andi %85, %87 : vector<1x256xi1>
    %cst_36 = arith.constant 0.000000e+00 : f32
    %89 = vector.broadcast %cst_36 : f32 to vector<36x256xf32>
    %90 = vector.shape_cast %88 : vector<1x256xi1> to vector<1x256xi1>
    %91 = vector.broadcast %90 : vector<1x256xi1> to vector<36x256xi1>
    %92 = arith.select %91, %83, %89 : vector<36x256xi1>, vector<36x256xf32>
    %93 = vector.extract_strided_slice %9 {offsets = [0, 16], sizes = [36, 240], strides = [1, 1]} : vector<36x256xf32> to vector<36x240xf32>
    %94 = vector.extract_strided_slice %9 {offsets = [0, 0], sizes = [36, 16], strides = [1, 1]} : vector<36x256xf32> to vector<36x16xf32>
    %95 = tpu.concatenate %93, %94 in 1 : vector<36x240xf32>, vector<36x16xf32> -> vector<36x256xf32>
    %c15_i32_37 = arith.constant 15 : i32
    %96 = vector.broadcast %c15_i32_37 : i32 to vector<1x256xi32>
    %97 = arith.cmpi slt, %4, %96 : vector<1x256xi32>
    %cst_38 = arith.constant 0.000000e+00 : f32
    %98 = vector.broadcast %cst_38 : f32 to vector<36x256xf32>
    %99 = vector.shape_cast %97 : vector<1x256xi1> to vector<1x256xi1>
    %100 = vector.broadcast %99 : vector<1x256xi1> to vector<36x256xi1>
    %101 = arith.select %100, %95, %98 : vector<36x256xi1>, vector<36x256xf32>
    %102 = vector.extract_strided_slice %9 {offsets = [0, 17], sizes = [36, 239], strides = [1, 1]} : vector<36x256xf32> to vector<36x239xf32>
    %103 = vector.extract_strided_slice %9 {offsets = [0, 0], sizes = [36, 17], strides = [1, 1]} : vector<36x256xf32> to vector<36x17xf32>
    %104 = tpu.concatenate %102, %103 in 1 : vector<36x239xf32>, vector<36x17xf32> -> vector<36x256xf32>
    %c15_i32_39 = arith.constant 15 : i32
    %105 = vector.broadcast %c15_i32_39 : i32 to vector<1x256xi32>
    %106 = arith.cmpi slt, %2, %105 : vector<1x256xi32>
    %c15_i32_40 = arith.constant 15 : i32
    %107 = vector.broadcast %c15_i32_40 : i32 to vector<1x256xi32>
    %108 = arith.cmpi slt, %4, %107 : vector<1x256xi32>
    %109 = arith.andi %106, %108 : vector<1x256xi1>
    %cst_41 = arith.constant 0.000000e+00 : f32
    %110 = vector.broadcast %cst_41 : f32 to vector<36x256xf32>
    %111 = vector.shape_cast %109 : vector<1x256xi1> to vector<1x256xi1>
    %112 = vector.broadcast %111 : vector<1x256xi1> to vector<36x256xi1>
    %113 = arith.select %112, %104, %110 : vector<36x256xi1>, vector<36x256xf32>
    %114 = tpu.concatenate %92, %101, %113 in 0 : vector<36x256xf32>, vector<36x256xf32>, vector<36x256xf32> -> vector<108x256xf32>
    %c0_42 = arith.constant 0 : index
    %c0_43 = arith.constant 0 : index
    %115 = vector.load %arg8[%c0_42, %c0_43] : memref<128x256xf32, #tpu.memory_space<vmem>>, vector<128x256xf32>
    %c2 = arith.constant 2 : index
    %c0_44 = arith.constant 0 : index
    %c0_45 = arith.constant 0 : index
    %116 = vector.load %arg4[%c2, %c0_44, %c0_45] : memref<3x128x108xbf16, #tpu.memory_space<vmem>>, vector<1x128x108xbf16>
    %117 = vector.shape_cast %116 : vector<1x128x108xbf16> to vector<128x108xbf16>
    %118 = arith.truncf %114 : vector<108x256xf32> to vector<108x256xbf16>
    %cst_46 = arith.constant dense<0.000000e+00> : vector<128x256xf32>
    %119 = tpu.matmul %117, %118, %cst_46 {dimension_numbers = #tpu.dot_dimension_numbers<[1], [0], [0], [1], [0, 0, 1, 1], [], []>} : vector<128x108xbf16>, vector<108x256xbf16>, vector<128x256xf32> -> vector<128x256xf32>
    %120 = arith.addf %115, %119 : vector<128x256xf32>
    %c0_47 = arith.constant 0 : index
    %c0_48 = arith.constant 0 : index
    %121 = vector.load %arg8[%c0_47, %c0_48] : memref<128x256xf32, #tpu.memory_space<vmem>>, vector<128x256xf32>
    tpu.vector_store %arg8[%c0_47, %c0_48], %120 {strides = array<i32>} : memref<128x256xf32, #tpu.memory_space<vmem>>, vector<128x256xf32>,
    %c0_49 = arith.constant 0 : index
    %c0_50 = arith.constant 0 : index
    %122 = vector.load %arg8[%c0_49, %c0_50] : memref<128x256xf32, #tpu.memory_space<vmem>>, vector<128x256xf32>
    %123 = vector.extract_strided_slice %122 {offsets = [0, 0], sizes = [32, 256], strides = [1, 1]} : vector<128x256xf32> to vector<32x256xf32>
    %124 = vector.extract_strided_slice %122 {offsets = [32, 0], sizes = [32, 256], strides = [1, 1]} : vector<128x256xf32> to vector<32x256xf32>
    %125 = vector.extract_strided_slice %122 {offsets = [64, 0], sizes = [32, 256], strides = [1, 1]} : vector<128x256xf32> to vector<32x256xf32>
    %126 = vector.extract_strided_slice %122 {offsets = [96, 0], sizes = [32, 256], strides = [1, 1]} : vector<128x256xf32> to vector<32x256xf32>
    %127 = arith.negf %123 : vector<32x256xf32>
    %128 = math.exp %127 : vector<32x256xf32>
    %cst_51 = arith.constant 1.000000e+00 : f32
    %129 = vector.broadcast %cst_51 : f32 to vector<32x256xf32>
    %130 = arith.addf %129, %128 : vector<32x256xf32>
    %131 = arith.divf %129, %130 : vector<32x256xf32>
    %132 = arith.negf %124 : vector<32x256xf32>
    %133 = math.exp %132 : vector<32x256xf32>
    %cst_52 = arith.constant 1.000000e+00 : f32
    %134 = vector.broadcast %cst_52 : f32 to vector<32x256xf32>
    %135 = arith.addf %134, %133 : vector<32x256xf32>
    %136 = arith.divf %134, %135 : vector<32x256xf32>
    %137 = arith.negf %125 : vector<32x256xf32>
    %138 = math.exp %137 : vector<32x256xf32>
    %cst_53 = arith.constant 1.000000e+00 : f32
    %139 = vector.broadcast %cst_53 : f32 to vector<32x256xf32>
    %140 = arith.addf %139, %138 : vector<32x256xf32>
    %141 = arith.divf %139, %140 : vector<32x256xf32>
    %142 = math.tanh %126 : vector<32x256xf32>
    %c0_54 = arith.constant 0 : index
    %c0_55 = arith.constant 0 : index
    %c0_56 = arith.constant 0 : index
    %143 = vector.load %arg3[%c0_54, %c0_55, %c0_56] : memref<1x32x256xf32, #tpu.memory_space<vmem>>, vector<1x32x256xf32>
    %144 = vector.shape_cast %143 : vector<1x32x256xf32> to vector<32x256xf32>
    %145 = arith.mulf %136, %144 : vector<32x256xf32>
    %146 = arith.mulf %131, %142 : vector<32x256xf32>
    %147 = arith.addf %145, %146 : vector<32x256xf32>
    %148 = math.tanh %147 : vector<32x256xf32>
    %149 = arith.mulf %141, %148 : vector<32x256xf32>
    %c0_57 = arith.constant 0 : index
    %c0_58 = arith.constant 0 : index
    %c0_59 = arith.constant 0 : index
    %150 = vector.load %arg7[%c0_57, %c0_58, %c0_59] : memref<1x32x256xf32, #tpu.memory_space<vmem>>, vector<1x32x256xf32>
    %151 = vector.shape_cast %150 : vector<1x32x256xf32> to vector<32x256xf32>
    %152 = vector.shape_cast %147 : vector<32x256xf32> to vector<1x32x256xf32>
    tpu.vector_store %arg7[%c0_57, %c0_58, %c0_59], %152 {strides = array<i32>} : memref<1x32x256xf32, #tpu.memory_space<vmem>>, vector<1x32x256xf32>,
    %c0_60 = arith.constant 0 : index
    %c0_61 = arith.constant 0 : index
    %c0_62 = arith.constant 0 : index
    %153 = vector.load %arg6[%c0_60, %c0_61, %c0_62] : memref<1x32x256xf32, #tpu.memory_space<vmem>>, vector<1x32x256xf32>
    %154 = vector.shape_cast %153 : vector<1x32x256xf32> to vector<32x256xf32>
    %155 = vector.shape_cast %149 : vector<32x256xf32> to vector<1x32x256xf32>
    tpu.vector_store %arg6[%c0_60, %c0_61, %c0_62], %155 {strides = array<i32>} : memref<1x32x256xf32, #tpu.memory_space<vmem>>, vector<1x32x256xf32>,
    return
  }
  func.func @transform_0(%arg0: i32) -> (i32, i32, i32) {
    %c0_i32 = arith.constant 0 : i32
    %c0_i32_0 = arith.constant 0 : i32
    %c0_i32_1 = arith.constant 0 : i32
    return %arg0, %c0_i32, %c0_i32_0 : i32, i32, i32
  }
  func.func @transform_1(%arg0: i32) -> (i32, i32, i32) {
    %c0_i32 = arith.constant 0 : i32
    %c0_i32_0 = arith.constant 0 : i32
    %c0_i32_1 = arith.constant 0 : i32
    return %arg0, %c0_i32, %c0_i32_0 : i32, i32, i32
  }
  func.func @transform_2(%arg0: i32) -> (i32, i32, i32) {
    %c0_i32 = arith.constant 0 : i32
    %c0_i32_0 = arith.constant 0 : i32
    %c0_i32_1 = arith.constant 0 : i32
    return %arg0, %c0_i32, %c0_i32_0 : i32, i32, i32
  }
  func.func @transform_3(%arg0: i32) -> (i32, i32, i32) {
    %c0_i32 = arith.constant 0 : i32
    %c0_i32_0 = arith.constant 0 : i32
    %c0_i32_1 = arith.constant 0 : i32
    %c0_i32_2 = arith.constant 0 : i32
    return %c0_i32, %c0_i32_0, %c0_i32_1 : i32, i32, i32
  }
  func.func @transform_4(%arg0: i32) -> (i32, i32) {
    %c0_i32 = arith.constant 0 : i32
    %c0_i32_0 = arith.constant 0 : i32
    %c0_i32_1 = arith.constant 0 : i32
    return %c0_i32, %c0_i32_0 : i32, i32
  }
  func.func @transform_5(%arg0: i32) -> (i32, i32, i32) {
    %c0_i32 = arith.constant 0 : i32
    %c0_i32_0 = arith.constant 0 : i32
    %c0_i32_1 = arith.constant 0 : i32
    return %arg0, %c0_i32, %c0_i32_0 : i32, i32, i32
  }
  func.func @transform_6(%arg0: i32) -> (i32, i32, i32) {
    %c0_i32 = arith.constant 0 : i32
    %c0_i32_0 = arith.constant 0 : i32
    %c0_i32_1 = arith.constant 0 : i32
    return %arg0, %c0_i32, %c0_i32_0 : i32, i32, i32
  }
}

</mosaic_0001>

<bundles_post_ra>
// kernel: tpu_custom_call.1
= control target key start
LH: loop header
LB: loop body
LE: loop exit
PB: predicated region body
PF: predicated region fallthrough
CT: control target
= control target key end

     0   :  { %12 = vsyncpa [#allocation4], 0  ;;  %s4311_s0 = inlined_call_operand.vmem [shape: f32[2,4,256], index: 0, kind: input, shape index: {}]   ;;  %s4312_s1 = inlined_call_operand.vmem [shape: f32[2,32,256], index: 1, kind: input, shape index: {}]   ;;  %s4313_s2 = inlined_call_operand.vmem [shape: f32[2,32,256], index: 2, kind: input, shape index: {}]   ;;  %s4314_s3 = inlined_call_operand.vmem [shape: bf16[3,128,108], index: 3, kind: input, shape index: {}]   ;;  %s4315_s4 = inlined_call_operand.vmem [shape: f32[128,1], index: 4, kind: input, shape index: {}]   ;;  %s4316_s5 = inlined_call_operand.hbm [shape: f32[2,32,256], index: 5, kind: output, shape index: {0}]   ;;  %s4317_s6 = inlined_call_operand.hbm [shape: f32[2,32,256], index: 6, kind: output, shape index: {1}]  }
   0x1   :  { %14 = vsyncpa [#allocation4 + $0x1], 0 }
   0x2   :  { %15 = vsyncpa [#allocation6], 0 }
   0x3   :  { %17 = vsyncpa [#allocation6 + $0x1], 0  ;;  %s3184_s21 = smov 0   ;;  %s3186_s22 = smov 0  }
   0x4   :  { %s3188_s23 = smov 0   ;;  %s3190_s24 = smov 0  }
   0x5 LB: > { %s3205_s25 = sadd.s32 4294967295, %s3134_s24   ;;  %s2416_s26 = sadd.s32 4294967294, %s3134_s24   ;;  %s3134_s24 = sphi %s3190_s24, %s4383_s24   ;;  %s3130_s23 = sphi %s3188_s23, %s4382_s23   ;;  %s3126_s22 = sphi %s3186_s22, %s4381_s22   ;;  %s3122_s21 = sphi %s3184_s21, %s4380_s21  }
   0x6   : > { %s3209_s27 = sadd.s32 1, %s3134_s24   ;;  %s150_s28 = sadd.s32 1, %s3130_s23 }
   0x7   : > { %s147_s29 = ssub.s32 %s3134_s24, %s3209_s27  ;;  %p160_p0 = scmp.ne.s32.totalorder %s3130_s23, %s3126_s22 }
   0x8   : > { %p148_p1 = scmp.eq.s32.totalorder %s147_s29, 0  ;;  %p161_p2 = scmp.eq.s32.totalorder %s3205_s25, 1 }
   0x9   : > { %p166_p3 = scmp.ne.s32.totalorder %s3126_s22, %s3122_s21  ;;  %p167_p4 = scmp.eq.s32.totalorder %s2416_s26, 1 }
   0xa   : > { %s3220_s30 = scalar_select %p148_p1, %s3130_s23, %s150_s28  }
   0xb   : > { %p3222_p5 = por %p161_p2, %p160_p0  ;;  %p3226_p6 = por %p167_p4, %p166_p3 }
   0xc   : > { %p2419_p7 = scmp.ge.s32.totalorder %s3134_s24, 1  ;;  %p241_p8 = scmp.lt.s32.totalorder %s3134_s24, 3 }
   0xe   : > { %p242_p9 = pnand %p2419_p7, %p241_p8 }
   0xf   : > { %p286_p10 = scmp.lt.s32.totalorder (!%p242_p9), %s3205_s25, 1  ;;  %s3136_s18 = smov (!%p242_p9), 16  }
  0x10   : > { %245 = sbr.rel (%p242_p9) target bundleno = 551 (0x227), region = 40  ;;  %s3137_s19 = smov (!%p242_p9), 15  }
  0x11   : > { %s3138_s20 = smov (!%p242_p9), 17   ;;  %s3139_s26 = smov (!%p242_p9), 127  }
  0x12   : > { %s3140_s28 = smov (!%p242_p9), 111   ;;  %s3142_s29 = smov (!%p242_p9), 112  }
  0x13   : > { %s3143_s11 = smov (!%p242_p9), 1   ;;  %s3144_s12 = smov (!%p242_p9), 113  }
  0x15   : > { %s3234_s9 = scalar_select %p286_p10, %s3205_s25, 1  ;;  %vm4318_vm0 = vcmask 1043456   ;;  %v3141_v39 = vmov 0   ;;  %v349_v62 = vld [vmem:[%s4315_s4 + $0x8] sm:$0xff]  ;;  %v348_v63 = vld [vmem:[%s4315_s4] sm:$0xff]  ;;  %vm569_vm1 = vcmask 130048  }
  0x16   : > { %914 = vmatprep.mubr.bf16.mxu1 %v3141_v39  ;;  %874 = vmatprep.mubr.bf16.mxu0 %v3141_v39  ;;  %vm629_vm2 = vcmask 121856   ;;  %vm835_vm6 = vcmask 1045504   ;;  %vm503_vm11 = vcmask 138240   ;;  %vm3145_vm14 = vmmov 1  }
  0x17   : > { %s2616_s10 = sshll.u32 %s3234_s9, 6  ;;  %s2615_s14 = sshll.u32 %s3234_s9, 3  ;;  %2890 = vset.pattern.permute.xlu1 %v3141_v39  ;;  %2889 = vset.pattern.permute.xlu0 %v3141_v39 }
  0x18   : > { %s295_s13 = scalar_lea.vmem %s4312_s1, %s2616_s10  ;;  %s290_s17 = scalar_lea.vmem %s4311_s0, %s2615_s14 }
  0x19   : > { %v315_v0 = vld [vmem:[%s295_s13 + $0x28] sm:$0xff]  ;;  %v317_v1 = vld [vmem:[%s295_s13 + $0x38] sm:$0xff]  ;;  %v314_v2 = vld [vmem:[%s295_s13 + $0x20] sm:$0xff] }
  0x1a   : > { %v338_v3 = vrot.slane %v315_v0, 4  ;;  %v3243_v4 = vrot.slane %v317_v1, 4  ;;  %v316_v5 = vld [vmem:[%s295_s13 + $0x30] sm:$0xff]  ;;  %v336_v6 = vrot.slane %v314_v2, 4  ;;  %v311_v7 = vld [vmem:[%s295_s13 + $0x8] sm:$0xff]  ;;  %v313_v8 = vld [vmem:[%s295_s13 + $0x18] sm:$0xff] }
  0x1b   : > { %v3245_v9 = vrot.slane %v316_v5, 4  ;;  %v331_v10 = vrot.slane %v311_v7, 4  ;;  %v310_v11 = vld [vmem:[%s295_s13] sm:$0xff]  ;;  %v312_v12 = vld [vmem:[%s295_s13 + $0x10] sm:$0xff]  ;;  %v334_v14 = vrot.slane %v313_v8, 4  ;;  %v351_v1 = vld [vmem:[%s4315_s4 + $0x18] sm:$0xff] }
  0x1c   : > { %v3249_v13 = vsel %vm4318_vm0, %v338_v3, %v3243_v4  ;;  %v330_v15 = vrot.slane %v310_v11, 4  ;;  %v332_v16 = vrot.slane %v312_v12, 4  ;;  %v309_v20 = vld [vmem:[%s290_s17] sm:$0xff]  ;;  %v1155_v44 = vrot.slane %v3243_v4, 4  ;;  %v350_v0 = vld [vmem:[%s4315_s4 + $0x10] sm:$0xff]  ;;  %v355_v5 = vld [vmem:[%s4315_s4 + $0x38] sm:$0xff] }
  0x1d   : > { %v2699_v17 = vpack.i.bf16 %v3243_v4, %v3249_v13  ;;  %v3258_v18 = vsel %vm4318_vm0, %v336_v6, %v3245_v9  ;;  %v3264_v21 = vsel %vm4318_vm0, %v331_v10, %v334_v14  ;;  %v3267_v22 = vsel %vm4318_vm0, %v334_v14, %v338_v3  ;;  %v352_v2 = vld [vmem:[%s4315_s4 + $0x20] sm:$0xff]  ;;  %v353_v3 = vld [vmem:[%s4315_s4 + $0x28] sm:$0xff]  ;;  %v359_v14 = vld [vmem:[%s4315_s4 + $0x58] sm:$0xff]  ;;  %s4319_s13 = sshll.u32 %s3205_s25, 10 }
  0x1e   : > { %v2704_v19 = vpack.i.bf16 %v3245_v9, %v3258_v18  ;;  %v3270_v23 = vsel %vm4318_vm0, %v330_v15, %v332_v16  ;;  %v3273_v24 = vsel %vm4318_vm0, %v332_v16, %v336_v6  ;;  %v2709_v25 = vpack.i.bf16 %v3267_v22, %v3264_v21  ;;  %v356_v7 = vld [vmem:[%s4315_s4 + $0x40] sm:$0xff]  ;;  %v357_v8 = vld [vmem:[%s4315_s4 + $0x48] sm:$0xff]  ;;  %s4228_s17 = scalar_lea.hbm %s4317_s6, %s4319_s13 }
  0x1f   : > { %2700 = vrot.lane.b32.xlu1 %v2699_v17, %s3136_s18  ;;  %2690 = vrot.lane.b32.xlu0 %v2699_v17, %s3137_s19  ;;  %v2714_v26 = vpack.i.bf16 %v3273_v24, %v3270_v23  ;;  %v319_v27 = vcombine.high %v309_v20, %v309_v20  ;;  %v3281_v28 = vsel %vm4318_vm0, %v309_v20, %v330_v15  ;;  %v1149_v41 = vrot.slane %v3258_v18, 4 }
  0x20   : > { %v3288_v30 = vpack.i.bf16 %v3249_v13, %v3258_v18  ;;  %v3292_v31 = vpack.i.bf16 %v3264_v21, %v3270_v23  ;;  %v2744_v33 = vpack.i.bf16 %v3249_v13, %v3267_v22  ;;  %v2739_v34 = vpack.i.bf16 %v3245_v9, %v3243_v4 }
  0x21   : > { %v3284_v29 = vsel %vm4318_vm0, %v319_v27, %v331_v10  ;;  %v2749_v36 = vpack.i.bf16 %v3258_v18, %v3273_v24  ;;  %v2759_v37 = vpack.i.bf16 %v3270_v23, %v3281_v28  ;;  %v2769_v38 = vpack.i.bf16 %v3243_v4, %v3245_v9  ;;  %v354_v4 = vld [vmem:[%s4315_s4 + $0x30] sm:$0xff] }
  0x22   : > { %v2734_v32 = vpack.i.bf16 %v3281_v28, %v3284_v29  ;;  %v2754_v35 = vpack.i.bf16 %v3264_v21, %v3284_v29  ;;  %v2789_v40 = vpack.i.bf16 %v3267_v22, %v3273_v24  ;;  %v1151_v42 = vrot.slane %v3249_v13, 4  ;;  %v358_v13 = vld [vmem:[%s4315_s4 + $0x50] sm:$0xff] }
  0x23   : > { %2705 = vrot.lane.b32.xlu1 %v2704_v19, %s3136_s18  ;;  %2695 = vrot.lane.b32.xlu0 %v2704_v19, %s3137_s19  ;;  %v1153_v43 = vrot.slane %v3245_v9, 4  ;;  %v2814_v47 = vpack.i.bf16 %v3284_v29, %v3281_v28  ;;  %v1143_v48 = vrot.slane %v3264_v21, 4  ;;  %v1147_v49 = vrot.slane %v3267_v22, 4 }
  0x24   : > { %v3332_v46 = vsel %vm4318_vm0, %v1151_v42, %v1155_v44  ;;  %v1141_v50 = vrot.slane %v3270_v23, 4  ;;  %v1145_v51 = vrot.slane %v3273_v24, 4  ;;  %v1140_v58 = vrot.slane %v3284_v29, 4 }
  0x25   : > { %v3329_v45 = vsel %vm4318_vm0, %v1149_v41, %v1153_v43  ;;  %v3348_v52 = vsel %vm4318_vm0, %v1143_v48, %v1147_v49  ;;  %v3351_v53 = vsel %vm4318_vm0, %v1147_v49, %v1151_v42  ;;  %v1139_v59 = vrot.slane %v3281_v28, 4 }
  0x26   : > { %v1225_v54 = vpack.c.bf16 %v3351_v53, %v3348_v52  ;;  %v3356_v55 = vsel %vm4318_vm0, %v1141_v50, %v1145_v51  ;;  %v3359_v56 = vsel %vm4318_vm0, %v1145_v51, %v1149_v41  ;;  %v3369_v60 = vsel %vm4318_vm0, %v1140_v58, %v1143_v48  ;;  %v361_v41 = vld [vmem:[%s4315_s4 + $0x68] sm:$0xff]  ;;  %v2896_v53 = vld [vmem:[%s4314_s3 + $0x30] sm:$0xff]  }
  0x27   : > { %2710 = vrot.lane.b32.xlu0 %v2709_v25, %s3137_s19  ;;  %2715 = vrot.lane.b32.xlu1 %v2714_v26, %s3137_s19  ;;  %v1224_v57 = vpack.c.bf16 %v3359_v56, %v3356_v55  ;;  %v3374_v61 = vsel %vm4318_vm0, %v1139_v59, %v1141_v50  ;;  %v302_v6 = vlaneseq }
  0x29   : > { %v3409_v9 = vand.u32 127, %v302_v6 }
  0x2b   : > { %2720 = vrot.lane.b32.xlu0 %v2709_v25, %s3136_s18  ;;  %2725 = vrot.lane.b32.xlu1 %v2714_v26, %s3136_s18  ;;  %v3412_v10 = vadd.s32 128, %v3409_v9  ;;  %v307_v15 = vshra.s32 %v3409_v9, 4  ;;  %v305_v20 = vand.u32 15, %v3409_v9 }
  0x2d   : > { %v308_v16 = vshra.s32 %v3412_v10, 4  ;;  %v306_v17 = vand.u32 15, %v3412_v10  ;;  %vm3426_vm3 = vcmp.ge.s32.totalorder %v307_v15, 1  ;;  %vm3444_vm7 = vcmp.lt.s32.totalorder %v305_v20, 15 }
  0x2e   : > { %vm3476_vm9 = vmand %vm3444_vm7, %vm3426_vm3 }
  0x2f   : > { %2735 = vrot.lane.b32.xlu1 %v2734_v32, %s3136_s18  ;;  %2730 = vrot.lane.b32.xlu0 %v2734_v32, %s3137_s19  ;;  %vm3432_vm4 = vcmp.ge.s32.totalorder %v308_v16, 1  ;;  %vm3436_vm5 = vcmp.lt.s32.totalorder %v306_v17, 15  ;;  %vm3490_vm10 = vcmp.ge.s32.totalorder %v306_v17, 1  ;;  %vm2440_vm13 = vmpackc.low %vm3476_vm9, %vm3476_vm9 }
  0x30   : > { %vm3464_vm8 = vmand %vm3436_vm5, %vm3432_vm4 }
  0x31   : > { %vm2437_vm12 = vmpackc.low %vm3464_vm8, %vm3464_vm8 }
  0x32   : > { %vm3550_vm15 = vmpackc.low %vm3464_vm8, %vm3145_vm14 }
  0x33   : > { %2745 = vrot.lane.b32.xlu1 %v2744_v33, %s3138_s20  ;;  %2740 = vrot.lane.b32.xlu0 %v2739_v34, %s3138_s20 }
  0x37   : > { %2755 = vrot.lane.b32.xlu1 %v2754_v35, %s3138_s20  ;;  %2750 = vrot.lane.b32.xlu0 %v2749_v36, %s3138_s20 }
  0x3b   : > { %2765 = vrot.lane.b32.xlu1 %v3288_v30, %s3139_s26  ;;  %2760 = vrot.lane.b32.xlu0 %v2759_v37, %s3138_s20 }
  0x3f   : > { %2775 = vrot.lane.b32.xlu1 %v3288_v30, %s3140_s28  ;;  %2770 = vrot.lane.b32.xlu0 %v2769_v38, %s3139_s26 }
  0x43   : > { %2785 = vrot.lane.b32.xlu1 %v3292_v31, %s3139_s26  ;;  %2780 = vrot.lane.b32.xlu0 %v2769_v38, %s3140_s28 }
  0x47   : > { %2795 = vrot.lane.b32.xlu1 %v3288_v30, %s3142_s29  ;;  %2790 = vrot.lane.b32.xlu0 %v2789_v40, %s3139_s26 }
  0x4b   : > { %2805 = vrot.lane.b32.xlu1 %v3292_v31, %s3140_s28  ;;  %2800 = vrot.lane.b32.xlu0 %v2769_v38, %s3142_s29 }
  0x4f   : > { %2815 = vrot.lane.b32.xlu1 %v2814_v47, %s3139_s26  ;;  %2810 = vrot.lane.b32.xlu0 %v2789_v40, %s3140_s28  ;;  %s3146_s26 = smov [#allocation5]  }
  0x53   : > { %2825 = vrot.lane.b32.xlu1 %v2789_v40, %s3142_s29  ;;  %2820 = vrot.lane.b32.xlu0 %v3292_v31, %s3142_s29 }
  0x57   : > { %2835 = vrot.lane.b32.xlu1 %v2739_v34, %s3143_s11  ;;  %2830 = vrot.lane.b32.xlu0 %v2814_v47, %s3140_s28  ;;  %s3048_s28 = sshll.u32 %s3146_s26, 4  ;;  %s3049_s28 = int_to_ptr.vmem [resolvable:$false] %s3048_s28 }
  0x5b   : > { %2845 = vrot.lane.b32.xlu1 %v2769_v38, %s3144_s12  ;;  %2840 = vrot.lane.b32.xlu0 %v2814_v47, %s3142_s29  ;;  %s3050_s29 = scalar_lea.vmem %s3049_s28, 2048 }
  0x5f   : > { %2855 = vrot.lane.b32.xlu1 %v2749_v36, %s3143_s11  ;;  %2850 = vrot.lane.b32.xlu0 %v2744_v33, %s3143_s11 }
  0x63   : > { %2865 = vrot.lane.b32.xlu1 %v3288_v30, %s3144_s12  ;;  %2860 = vrot.lane.b32.xlu0 %v2789_v40, %s3144_s12  ;;  %v360_v40 = vld [vmem:[%s4315_s4 + $0x60] sm:$0xff] }
  0x67   : > { %2875 = vrot.lane.b32.xlu1 %v2759_v37, %s3143_s11  ;;  %2870 = vrot.lane.b32.xlu0 %v2754_v35, %s3143_s11  ;;  %s4188_s11 = scalar_lea.vmem %s4313_s2, %s2616_s10 }
  0x6b   : > { %2885 = vrot.lane.b32.xlu1 %v3292_v31, %s3144_s12  ;;  %2880 = vrot.lane.b32.xlu0 %v2814_v47, %s3144_s12  ;;  %s4192_s12 = sand.u32 1, %s3126_s22  }
  0x6c   : > { %s2420_s9 = sshll.u32 %s4192_s12, 6  ;;  %s2269_s19 = scalar_lea.sflag [#allocation6], %s4192_s12 }
  0x6d   : > { %s4203_s10 = scalar_lea.vmem [#allocation5], %s2420_s9 }
  0x6e   : > { %s2298_s14 = sshll.u32 %s4203_s10, 4  ;;  %s4230_s14 = int_to_ptr.vmem [resolvable:$true] %s2298_s14 }
  0x6f   : > { %371 = vperm.xlu1 %2890, %v349_v62   ;;  %366 = vperm.xlu0 %2889, %v348_v63   ;;  %s3044_s20 = scalar_lea.vmem %s4230_s14, 1024  ;;  %p3051_p0 = scmp.lt.s32.totalorder %s4230_s14, %s3049_s28 }
  0x70   : > { %p3045_p11 = scmp.ne.s32.totalorder %s4230_s14, %s3044_s20  ;;  %p3052_p1 = scmp.lt.s32.totalorder %s3050_s29, %s3044_s20 }
  0x72   : > { %p3046_p12 = pnand %p3045_p11, %p3222_p5  ;;  %p3053_p2 = por %p3052_p1, %p3051_p0 }
  0x73   : > { %376 = vperm.xlu1 %2890, %v350_v0   ;;  %381 = vperm.xlu0 %2889, %v351_v1  }
  0x74   : > { %p3047_p13 = pneg %p3046_p12 }
  0x76   : > { %p3054_p3 = pnand %p3053_p2, %p3047_p13 }
  0x77   : > { %386 = vperm.xlu1 %2890, %v352_v2   ;;  %391 = vperm.xlu0 %2889, %v353_v3  }
  0x7b   : > { %396 = vperm.xlu1 %2890, %v354_v4   ;;  %401 = vperm.xlu0 %2889, %v355_v5  }
  0x7f   : > { %406 = vperm.xlu1 %2890, %v356_v7   ;;  %411 = vperm.xlu0 %2889, %v357_v8  }
  0x83   : > { %416 = vperm.xlu1 %2890, %v358_v13   ;;  %421 = vperm.xlu0 %2889, %v359_v14  }
  0x87   : > { %426 = vperm.xlu1 %2890, %v360_v40   ;;  %431 = vperm.xlu0 %2889, %v361_v41   ;;  %v362_v41 = vld [vmem:[%s4315_s4 + $0x70] sm:$0xff] }
  0x8b   : > { %436 = vperm.xlu1 %2890, %v362_v41  }
  0x91   : > { %v2701_v11 = vpop.permute.xlu1 %2700  ;;  %v2691_v12 = vpop.permute.xlu0 %2690 }
  0x92   : > { %v2703_v21 = vunpack.i.h.bf16 %v2701_v11  ;;  %v2702_v24 = vunpack.i.l.bf16 %v2701_v11  ;;  %v2693_v34 = vunpack.i.h.bf16 %v2691_v12  ;;  %v2692_v35 = vunpack.i.l.bf16 %v2691_v12 }
  0x95   : > { %v2706_v18 = vpop.permute.xlu1 %2705  ;;  %v2696_v19 = vpop.permute.xlu0 %2695 }
  0x96   : > { %v2708_v22 = vunpack.i.h.bf16 %v2706_v18  ;;  %v2707_v23 = vunpack.i.l.bf16 %v2706_v18  ;;  %v2698_v32 = vunpack.i.h.bf16 %v2696_v19  ;;  %v2697_v33 = vunpack.i.l.bf16 %v2696_v19 }
  0x98   : > { %v574_v30 = vsel %vm569_vm1, %v2708_v22, %v2703_v21  ;;  %v589_v31 = vsel %vm569_vm1, %v2703_v21, %v2708_v22  ;;  %v573_v44 = vsel %vm569_vm1, %v2707_v23, %v2702_v24  ;;  %v588_v47 = vsel %vm569_vm1, %v2702_v24, %v2707_v23 }
  0x99   : > { %v2711_v36 = vpop.permute.xlu0 %2710  ;;  %v2716_v37 = vpop.permute.xlu1 %2715  ;;  %v602_v42 = vsel %vm3426_vm3, %v589_v31, 0.0  ;;  %v603_v43 = vsel %vm3432_vm4, %v574_v30, 0.0  ;;  %v633_v63 = vsel %vm629_vm2, %v2697_v33, %v2692_v35  ;;  %v634_v0 = vsel %vm629_vm2, %v2698_v32, %v2693_v34 }
  0x9a   : > { %v2713_v48 = vunpack.i.h.bf16 %v2711_v36  ;;  %v2712_v49 = vunpack.i.l.bf16 %v2711_v36  ;;  %v2718_v50 = vunpack.i.h.bf16 %v2716_v37  ;;  %v2717_v51 = vunpack.i.l.bf16 %v2716_v37 }
  0x9b   : > { %v648_v1 = vsel %vm629_vm2, %v2692_v35, %v2697_v33  ;;  %v649_v2 = vsel %vm629_vm2, %v2693_v34, %v2698_v32  ;;  %v600_v4 = vsel %vm3426_vm3, %v588_v47, 0.0  ;;  %v601_v5 = vsel %vm3432_vm4, %v573_v44, 0.0 }
  0x9c   : > { %v632_v6 = vsel %vm629_vm2, %v2718_v50, %v2713_v48  ;;  %v631_v7 = vsel %vm629_vm2, %v2717_v51, %v2712_v49  ;;  %v692_v12 = vrot.slane %v602_v42, 4  ;;  %v665_v14 = vsel %vm3464_vm8, %v633_v63, 0.0  ;;  %v363_v42 = vld [vmem:[%s4315_s4 + $0x78] sm:$0xff] }
  0x9d   : > { %v2721_v8 = vpop.permute.xlu0 %2720  ;;  %v2726_v11 = vpop.permute.xlu1 %2725  ;;  %v2438_v13 = vpack.c.bf16 %v632_v6, %v631_v7  ;;  %v667_v18 = vsel %vm3464_vm8, %v634_v0, 0.0  ;;  %v664_v22 = vsel %vm3476_vm9, %v648_v1, 0.0  ;;  %v666_v23 = vsel %vm3476_vm9, %v649_v2, 0.0  ;;  %441 = vperm.xlu0 %2889, %v363_v42  }
  0x9e   : > { %v769_v21 = vpack.c.bf16 %v667_v18, %v665_v14  ;;  %v2723_v24 = vunpack.i.h.bf16 %v2721_v8  ;;  %v768_v30 = vpack.c.bf16 %v666_v23, %v664_v22  ;;  %v2722_v31 = vunpack.i.l.bf16 %v2721_v8 }
  0x9f   : > { %v2728_v32 = vunpack.i.h.bf16 %v2726_v11  ;;  %v2727_v33 = vunpack.i.l.bf16 %v2726_v11  ;;  %v694_v34 = vrot.slane %v603_v43, 4  ;;  %v3498_v35 = vrot.slane %v600_v4, 4 }
  0xa0   : > { %v647_v17 = vsel %vm629_vm2, %v2713_v48, %v2718_v50  ;;  %v646_v36 = vsel %vm629_vm2, %v2712_v49, %v2717_v51  ;;  %2436 = vmatprep.subr.msk.bf16.mxu0 %vm835_vm6, %v769_v21  ;;  %2620 = vmatprep.subr.msk.bf16.mxu1 %vm835_vm6, %v769_v21  ;;  %v837_v43 = vsel %vm835_vm6, %v768_v30, 0  ;;  %v690_v0 = vrot.slane %v601_v5, 4 }
  0xa1   : > { %v2736_v37 = vpop.permute.xlu1 %2735  ;;  %v2731_v40 = vpop.permute.xlu0 %2730  ;;  %v572_v44 = vsel %vm569_vm1, %v2728_v32, %v2723_v24  ;;  %v587_v47 = vsel %vm569_vm1, %v2723_v24, %v2728_v32  ;;  %v571_v48 = vsel %vm569_vm1, %v2727_v33, %v2722_v31  ;;  %845 = vmatpush1.bf16.msra.mxu0 %v837_v43  ;;  %2627 = vmatpush1.bf16.msra.mxu1 %v837_v43  ;;  %vm3583_vm8 = vcmp.ge.s32.totalorder %v305_v20, 1 }
  0xa2   : > { %v598_v49 = vsel %vm3426_vm3, %v587_v47, 0.0  ;;  %v599_v50 = vsel %vm3432_vm4, %v572_v44, 0.0  ;;  %v586_v51 = vsel %vm569_vm1, %v2722_v31, %v2727_v33  ;;  %v597_v63 = vsel %vm3432_vm4, %v571_v48, 0.0  ;;  %2439 = vmatprep.subr.msk.bf16.mxu0 %vm2437_vm12, %v2438_v13  ;;  %2621 = vmatprep.subr.msk.bf16.mxu1 %vm2437_vm12, %v2438_v13 }
  0xa3   : > { %v2441_v1 = vpack.c.bf16 %v647_v17, %v646_v36  ;;  %v686_v2 = vrot.slane %v599_v50, 4  ;;  %v596_v4 = vsel %vm3426_vm3, %v586_v51, 0.0  ;;  %v682_v5 = vrot.slane %v597_v63, 4 }
  0xa4   : > { %v2738_v6 = vunpack.i.h.bf16 %v2736_v37  ;;  %v2737_v7 = vunpack.i.l.bf16 %v2736_v37  ;;  %v2733_v8 = vunpack.i.h.bf16 %v2731_v40  ;;  %v684_v18 = vrot.slane %v598_v49, 4  ;;  %v2902_v49 = vld [vmem:[%s4314_s3 + $0x48] sm:$0xff]  }
  0xa5   : > { %v3539_v11 = vpop.permute.xlu1 %2745  ;;  %v2741_v14 = vpop.permute.xlu0 %2740  ;;  %v693_v21 = vsel %vm4318_vm0, %v3498_v35, %v692_v12  ;;  %v2732_v22 = vunpack.i.l.bf16 %v2731_v40  ;;  %v3543_v24 = vrot.slane %v596_v4, 4  ;;  %2442 = vmatpush1.bf16.msk.msra.mxu0 %vm2440_vm13, %v2441_v1  ;;  %2628 = vmatpush1.bf16.msk.msra.mxu1 %vm2440_vm13, %v2441_v1  ;;  %v695_v33 = vsel %vm4318_vm0, %v690_v0, %v694_v34  ;;  %v2897_v34 = vld [vmem:[%s4314_s3 + $0x10] sm:$0xff]  }
  0xa6   : > { %v2743_v23 = vunpack.i.h.bf16 %v2741_v14  ;;  %v570_v13 = vsel %vm569_vm1, %v2738_v6, %v2737_v7  ;;  %v585_v30 = vsel %vm569_vm1, %v2737_v7, %v2738_v6  ;;  %v2742_v31 = vunpack.i.l.bf16 %v2741_v14  ;;  %vm3562_vm1 = vmpackc.low %vm3476_vm9, %vm3145_vm14 }
  0xa7   : > { %v595_v12 = vsel %vm3432_vm4, %v570_v13, 0.0  ;;  %v630_v17 = vsel %vm629_vm2, %v2733_v8, %v2732_v22  ;;  %v645_v36 = vsel %vm629_vm2, %v2732_v22, %v2733_v8  ;;  %v687_v44 = vsel %vm4318_vm0, %v682_v5, %v686_v2  ;;  %vm3573_vm2 = vmand %vm3490_vm10, %vm3432_vm4 }
  0xa8   : > { %v679_v62 = vrot.slane %v595_v12, 4  ;;  %v2444_v40 = vpack.c.bf16 %v630_v17, %v695_v33  ;;  %v2447_v41 = vpack.c.bf16 %v645_v36, %v693_v21  ;;  %v594_v3 = vsel %vm3426_vm3, %v585_v30, 0.0  ;;  %vm3609_vm9 = vmand %vm3583_vm8, %vm3426_vm3 }
  0xa9   : > { %v3566_v42 = vpop.permute.xlu1 %2755  ;;  %v2751_v43 = vpop.permute.xlu0 %2750  ;;  %v2748_v47 = vunpack.i.h.bf16 %v3539_v11  ;;  %v508_v48 = vsel %vm503_vm11, %v2743_v23, %v2742_v31  ;;  %v691_v51 = vsel %vm4318_vm0, %v686_v2, %v690_v0  ;;  %v685_v63 = vsel %vm4318_vm0, %v3543_v24, %v684_v18 }
  0xaa   : > { %2445 = vmatprep.subr.msk.bf16.mxu0 %vm3550_vm15, %v2444_v40  ;;  %2622 = vmatprep.subr.msk.bf16.mxu1 %vm3550_vm15, %v2444_v40  ;;  %v2753_v26 = vunpack.i.h.bf16 %v2751_v43  ;;  %v2752_v50 = vunpack.i.l.bf16 %v2751_v43  ;;  %v2747_v1 = vunpack.i.l.bf16 %v3539_v11  ;;  %v763_v20 = vpack.c.bf16 %v691_v51, %v687_v44  ;;  %vm3642_vm15 = vmpackc.low %vm3573_vm2, %vm3573_vm2 }
  0xab   : > { %2448 = vmatpush1.bf16.msk.msra.mxu0 %vm3562_vm1, %v2447_v41  ;;  %2629 = vmatpush1.bf16.msk.msra.mxu1 %vm3562_vm1, %v2447_v41  ;;  %v689_v4 = vsel %vm4318_vm0, %v684_v18, %v3498_v35  ;;  %v543_v6 = vsel %vm3573_vm2, %v508_v48, 0.0  ;;  %v523_v0 = vsel %vm503_vm11, %v2742_v31, %v2743_v23  ;;  %vm1099_vm4 = vcmask 1039360  }
  0xac   : > { %v683_v8 = vsel %vm4318_vm0, %v679_v62, %v682_v5  ;;  %vm3615_vm12 = vcmp.lt.s32.totalorder %v308_v16, 15  ;;  %v678_v14 = vrot.slane %v594_v3, 4  ;;  %v507_v18 = vsel %vm503_vm11, %v2753_v26, %v2748_v47  ;;  %850 = vmatprep.subr.bf16.mxu0 %v763_v20  ;;  %2623 = vmatprep.subr.bf16.mxu1 %v763_v20 }
  0xad   : > { %v2766_v2 = vpop.permute.xlu1 %2765  ;;  %v2761_v7 = vpop.permute.xlu0 %2760  ;;  %v506_v21 = vsel %vm503_vm11, %v2752_v50, %v2747_v1  ;;  %v762_v25 = vpack.c.bf16 %v689_v4, %v685_v63  ;;  %v707_v13 = vsel %vm4318_vm0, %v543_v6, %v679_v62  ;;  %v542_v30 = vsel %vm3609_vm9, %v523_v0, 0.0  ;;  %vm3653_vm1 = vmand %vm3436_vm5, %vm3615_vm12 }
  0xae   : > { %v2768_v5 = vunpack.i.h.bf16 %v2766_v2  ;;  %v2767_v22 = vunpack.i.l.bf16 %v2766_v2  ;;  %v2763_v23 = vunpack.i.h.bf16 %v2761_v7  ;;  %v2762_v10 = vunpack.i.l.bf16 %v2761_v7 }
  0xaf   : > { %851 = vmatpush1.bf16.msra.mxu0 %v762_v25  ;;  %2630 = vmatpush1.bf16.msra.mxu1 %v762_v25  ;;  %v761_v16 = vpack.c.bf16 %v683_v8, %v707_v13  ;;  %vm1623_vm3 = vcmask 908288   ;;  %v2758_v31 = vunpack.i.h.bf16 %v3566_v42  ;;  %v522_v32 = vsel %vm503_vm11, %v2748_v47, %v2753_v26 }
  0xb0   : > { %v521_v12 = vsel %vm503_vm11, %v2747_v1, %v2752_v50  ;;  %vm3629_vm13 = vcmp.lt.s32.totalorder %v307_v15, 15  ;;  %v2757_v37 = vunpack.i.l.bf16 %v3566_v42  ;;  %v2450_v62 = vpack.c.bf16 %v507_v18, %v506_v21  ;;  %v2893_v15 = vld [vmem:[%s4314_s3] sm:$0xff]  }
  0xb1   : > { %v2776_v33 = vpop.permute.xlu1 %2775  ;;  %v2771_v17 = vpop.permute.xlu0 %2770  ;;  %852 = vmatprep.subr.bf16.mxu0 %v761_v16  ;;  %2624 = vmatprep.subr.bf16.mxu1 %v761_v16  ;;  %v681_v40 = vsel %vm4318_vm0, %v678_v14, %v3543_v24  ;;  %v706_v41 = vsel %vm4318_vm0, %v542_v30, %v678_v14  ;;  %v1123_v43 = vsel %vm1099_vm4, %v2768_v5, %v2767_v22  ;;  %vm1563_vm2 = vcmask 916480   ;;  %vm3666_vm0 = vmpackc.low %vm3609_vm9, %vm3609_vm9 }
  0xb2   : > { %v505_v44 = vsel %vm503_vm11, %v2763_v23, %v2758_v31  ;;  %v760_v3 = vpack.c.bf16 %v681_v40, %v706_v41  ;;  %v2778_v9 = vunpack.i.h.bf16 %v2776_v33  ;;  %v504_v42 = vsel %vm503_vm11, %v2762_v10, %v2757_v37  ;;  %vm3706_vm9 = vmand %vm3444_vm7, %vm3629_vm13 }
  0xb3   : > { %v2777_v47 = vunpack.i.l.bf16 %v2776_v33  ;;  %v2773_v48 = vunpack.i.h.bf16 %v2771_v17  ;;  %v2772_v24 = vunpack.i.l.bf16 %v2771_v17  ;;  %v2453_v26 = vpack.c.bf16 %v522_v32, %v521_v12 }
  0xb4   : > { %v1103_v50 = vsel %vm1099_vm4, %v2767_v22, %v2768_v5  ;;  %v520_v51 = vsel %vm503_vm11, %v2758_v31, %v2763_v23  ;;  %853 = vmatpush1.bf16.msra.mxu0 %v760_v3  ;;  %2631 = vmatpush1.bf16.msra.mxu1 %v760_v3  ;;  %v519_v20 = vsel %vm503_vm11, %v2757_v37, %v2762_v10  ;;  %v1136_v7 = vsel %vm3436_vm5, %v1123_v43, 0.0 }
  0xb5   : > { %v2786_v63 = vpop.permute.xlu1 %2785  ;;  %v2781_v1 = vpop.permute.xlu0 %2780  ;;  %v1647_v4 = vsel %vm1623_vm3, %v2778_v9, %v2777_v47  ;;  %v1104_v6 = vsel %vm1099_vm4, %v2772_v24, %v2773_v48  ;;  %v1124_v0 = vsel %vm1099_vm4, %v2773_v48, %v2772_v24  ;;  %2451 = vmatprep.subr.msk.bf16.mxu0 %vm3642_vm15, %v2450_v62  ;;  %v2456_v8 = vpack.c.bf16 %v505_v44, %v504_v42  ;;  %v2892_v44 = vld [vmem:[%s4314_s3 + $0x20] sm:$0xff]  }
  0xb6   : > { %v1138_v14 = vsel %vm3436_vm5, %v1124_v0, 0.0  ;;  %2625 = vmatprep.subr.msk.bf16.mxu1 %vm3642_vm15, %v2450_v62  ;;  %v2788_v18 = vunpack.i.h.bf16 %v2786_v63  ;;  %v2787_v21 = vunpack.i.l.bf16 %v2786_v63  ;;  %v2783_v25 = vunpack.i.h.bf16 %v2781_v1 }
  0xb7   : > { %v2782_v5 = vunpack.i.l.bf16 %v2781_v1  ;;  %v1137_v11 = vsel %vm3444_vm7, %v1104_v6, 0.0  ;;  %v2459_v22 = vpack.c.bf16 %v520_v51, %v519_v20  ;;  %v1662_v23 = vsel %vm3653_vm1, %v1647_v4, 0.0 }
  0xb8   : > { %2454 = vmatpush1.bf16.msk.msra.mxu0 %vm3666_vm0, %v2453_v26  ;;  %2632 = vmatpush1.bf16.msk.msra.mxu1 %vm3666_vm0, %v2453_v26  ;;  %v1231_v16 = vpack.c.bf16 %v1138_v14, %v1136_v7  ;;  %v1135_v30 = vsel %vm3444_vm7, %v1103_v50, 0.0  ;;  %v1627_v41 = vsel %vm1623_vm3, %v2777_v47, %v2778_v9  ;;  %v1101_v43 = vsel %vm1099_vm4, %v2787_v21, %v2788_v18 }
  0xb9   : > { %v2796_v13 = vpop.permute.xlu1 %2795  ;;  %v2791_v10 = vpop.permute.xlu0 %2790  ;;  %v1628_v31 = vsel %vm1623_vm3, %v2782_v5, %v2783_v25  ;;  %v1648_v32 = vsel %vm1623_vm3, %v2783_v25, %v2782_v5  ;;  %2457 = vmatprep.subr.msk.bf16.mxu0 %vm3642_vm15, %v2456_v8  ;;  %2626 = vmatprep.subr.msk.bf16.mxu1 %vm3642_vm15, %v2456_v8  ;;  %v1230_v40 = vpack.c.bf16 %v1137_v11, %v1135_v30  ;;  %vm810_vm11 = vcmask 883712   ;;  %vm2497_vm15 = vmpackc.low %vm3444_vm7, %vm3444_vm7 }
  0xba   : > { %v2798_v12 = vunpack.i.h.bf16 %v2796_v13  ;;  %v2797_v33 = vunpack.i.l.bf16 %v2796_v13  ;;  %v1664_v17 = vsel %vm3653_vm1, %v1648_v32, 0.0  ;;  %v2793_v37 = vunpack.i.h.bf16 %v2791_v10 }
  0xbb   : > { %v2792_v62 = vunpack.i.l.bf16 %v2791_v10  ;;  %v1767_v3 = vpack.c.bf16 %v1664_v17, %v1662_v23  ;;  %v1121_v9 = vsel %vm1099_vm4, %v2788_v18, %v2787_v21  ;;  %v1663_v50 = vsel %vm3706_vm9, %v1628_v31, 0.0 }
  0xbc   : > { %2460 = vmatpush1.bf16.msk.msra.mxu0 %vm3666_vm0, %v2459_v22  ;;  %2633 = vmatpush1.bf16.msk.msra.mxu1 %vm3666_vm0, %v2459_v22  ;;  %v1567_v47 = vsel %vm1563_vm2, %v2797_v33, %v2798_v12  ;;  %v1587_v51 = vsel %vm1563_vm2, %v2798_v12, %v2797_v33  ;;  %v1297_v20 = vsel %vm835_vm6, %v1230_v40, 0  ;;  %v1661_v0 = vsel %vm3706_vm9, %v1627_v41, 0.0  ;;  %vm2494_vm0 = vmpackc.low %vm3436_vm5, %vm3436_vm5  ;;  %v2894_v40 = vld [vmem:[%s4314_s3 + $0x28] sm:$0xff]  }
  0xbd   : > { %v1122_v48 = vsel %vm1099_vm4, %v2793_v37, %v2792_v62  ;;  %v2806_v24 = vpop.permute.xlu1 %2805  ;;  %v2801_v26 = vpop.permute.xlu0 %2800  ;;  %v1102_v63 = vsel %vm1099_vm4, %v2792_v62, %v2793_v37  ;;  %2493 = vmatprep.subr.msk.bf16.mxu1 %vm835_vm6, %v1231_v16  ;;  %2550 = vmatprep.subr.msk.bf16.mxu0 %vm835_vm6, %v1767_v3  ;;  %v1599_v2 = vsel %vm3629_vm13, %v1567_v47, 0.0  ;;  %v1766_v14 = vpack.c.bf16 %v1663_v50, %v1661_v0 }
  0xbe   : > { %v2495_v1 = vpack.c.bf16 %v1122_v48, %v1121_v9  ;;  %v2803_v4 = vunpack.i.h.bf16 %v2801_v26  ;;  %v2802_v6 = vunpack.i.l.bf16 %v2801_v26  ;;  %v2808_v7 = vunpack.i.h.bf16 %v2806_v24 }
  0xbf   : > { %2465 = vmatmul.mubr.msk.bf16.vlgmr.msra.gmra.mxu1 %vm810_vm11, %v2892_v44  ;;  %v2807_v8 = vunpack.i.l.bf16 %v2806_v24  ;;  %2461 = vmatmul.mubr.msk.bf16.vlgmr.msra.gmra.mxu0 %vm810_vm11, %v2893_v15  ;;  %v1600_v18 = vsel %vm3615_vm12, %v1587_v51, 0.0  ;;  %v2498_v21 = vpack.c.bf16 %v1102_v63, %v1101_v43  ;;  %v1833_v10 = vsel %vm835_vm6, %v1766_v14, 0  ;;  %vm3760_vm6 = vmpackc.low %vm3436_vm5, %vm3145_vm14 }
  0xc0   : > { %1305 = vmatpush1.bf16.msra.mxu1 %v1297_v20  ;;  %v1568_v25 = vsel %vm1563_vm2, %v2802_v6, %v2803_v4  ;;  %v1588_v5 = vsel %vm1563_vm2, %v2803_v4, %v2802_v6  ;;  %924 = vmatprep.mubr.bf16.mxu1 %v3141_v39  ;;  %v3751_v30 = vrot.slane %v1599_v2, 4  ;;  %v3754_v12 = vrot.slane %v1600_v18, 4  ;;  %vm2551_vm5 = vmpackc.low %vm3653_vm1, %vm3653_vm1 }
  0xc1   : > { %v2816_v11 = vpop.permute.xlu1 %2815  ;;  %v2811_v22 = vpop.permute.xlu0 %2810  ;;  %v1601_v23 = vsel %vm3629_vm13, %v1568_v25, 0.0  ;;  %v1602_v13 = vsel %vm3615_vm12, %v1588_v5, 0.0  ;;  %2496 = vmatprep.subr.msk.bf16.mxu1 %vm2494_vm0, %v2495_v1  ;;  %1841 = vmatpush1.bf16.msra.mxu0 %v1833_v10  ;;  %v1625_v33 = vsel %vm1623_vm3, %v2807_v8, %v2808_v7  ;;  %v1645_v41 = vsel %vm1623_vm3, %v2808_v7, %v2807_v8  ;;  %vm3785_vm0 = vmpackc.low %vm3444_vm7, %vm3145_vm14 }
  0xc2   : > { %v2818_v16 = vunpack.i.h.bf16 %v2816_v11  ;;  %v2817_v31 = vunpack.i.l.bf16 %v2816_v11  ;;  %v2813_v32 = vunpack.i.h.bf16 %v2811_v22  ;;  %884 = vmatprep.mubr.bf16.mxu0 %v3141_v39  ;;  %v1689_v17 = vrot.slane %v1601_v23, 4 }
  0xc3   : > { %v2812_v37 = vunpack.i.l.bf16 %v2811_v22  ;;  %v1691_v43 = vrot.slane %v1602_v13, 4  ;;  %vm1044_vm7 = vcmask 7168  }
  0xc4   : > { %2499 = vmatpush1.bf16.msk.msra.mxu1 %vm2497_vm15, %v2498_v21  ;;  %v1100_v44 = vsel %vm1099_vm4, %v2817_v31, %v2818_v16  ;;  %v1120_v27 = vsel %vm1099_vm4, %v2818_v16, %v2817_v31  ;;  %vm2554_vm4 = vmpackc.low %vm3706_vm9, %vm3706_vm9  ;;  %vm4362_vm15 = vcmask 1043456  }
  0xc5   : > { %v2826_v3 = vpop.permute.xlu1 %2825  ;;  %v2821_v15 = vpop.permute.xlu0 %2820  ;;  %v2501_v9 = vpack.c.bf16 %v1120_v27, %v3332_v46  ;;  %v2504_v47 = vpack.c.bf16 %v1100_v44, %v3329_v45  ;;  %v1626_v48 = vsel %vm1623_vm3, %v2812_v37, %v2813_v32  ;;  %v1646_v24 = vsel %vm1623_vm3, %v2813_v32, %v2812_v37  ;;  %v2895_v45 = vld [vmem:[%s4314_s3 + $0x8] sm:$0xff]  }
  0xc6   : > { %v2552_v50 = vpack.c.bf16 %v1646_v24, %v1645_v41  ;;  %v2555_v51 = vpack.c.bf16 %v1626_v48, %v1625_v33  ;;  %v2828_v63 = vunpack.i.h.bf16 %v2826_v3  ;;  %v2827_v1 = vunpack.i.l.bf16 %v2826_v3 }
  0xc7   : > { %v2823_v46 = vunpack.i.h.bf16 %v2821_v15  ;;  %v2822_v20 = vunpack.i.l.bf16 %v2821_v15  ;;  %2502 = vmatprep.subr.msk.bf16.mxu1 %vm3760_vm6, %v2501_v9  ;;  %2466 = vmatmul.mubr.msk.bf16.gmra.mxu1 %vm810_vm11, %v2894_v40  ;;  %v3800_v38 = vsel %vm4362_vm15, %v3751_v30, %v1689_v17  ;;  %vm4363_vm6 = vmmov %vm4362_vm15  ;;  %vm1499_vm15 = vcmask 924672   ;;  %v2904_v40 = vld [vmem:[%s4314_s3 + $0x50] sm:$0xff]  }
  0xc8   : > { %v1566_v4 = vsel %vm1563_vm2, %v2827_v1, %v2828_v63  ;;  %v1586_v6 = vsel %vm1563_vm2, %v2828_v63, %v2827_v1  ;;  %2553 = vmatprep.subr.msk.bf16.mxu0 %vm2551_vm5, %v2552_v50  ;;  %2505 = vmatpush1.bf16.msk.msra.mxu1 %vm3785_vm0, %v2504_v47  ;;  %v1692_v7 = vsel %vm4363_vm6, %v3754_v12, %v1691_v43  ;;  %vm4364_vm5 = vmmov %vm4363_vm6 }
  0xc9   : > { %v2836_v0 = vpop.permute.xlu1 %2835  ;;  %v2831_v2 = vpop.permute.xlu0 %2830  ;;  %v1597_v8 = vsel %vm3629_vm13, %v1566_v4, 0.0  ;;  %v1598_v14 = vsel %vm3615_vm12, %v1586_v6, 0.0  ;;  %v1565_v18 = vsel %vm1563_vm2, %v2822_v20, %v2823_v46  ;;  %v1585_v21 = vsel %vm1563_vm2, %v2823_v46, %v2822_v20  ;;  %2556 = vmatpush1.bf16.msk.msra.mxu0 %vm2554_vm4, %v2555_v51  ;;  %1310 = vmatprep.subr.bf16.mxu1 %v1225_v54  ;;  %vm4365_vm0 = vmmov %vm4364_vm5 }
  0xca   : > { %v3827_v25 = vrot.slane %v1597_v8, 4  ;;  %v1683_v5 = vrot.slane %v1598_v14, 4  ;;  %v1595_v11 = vsel %vm3629_vm13, %v1565_v18, 0.0  ;;  %v1596_v22 = vsel %vm3615_vm12, %v1585_v21, 0.0  ;;  %2462 = vmatmul.mubr.msk.bf16.gmra.mxu0 %vm810_vm11, %v2895_v45  ;;  %934 = vmatprep.mubr.bf16.mxu1 %v3141_v39  ;;  %vm3859_vm4 = vmand %vm3583_vm8, %vm3629_vm13  ;;  %v2913_v21 = vld [vmem:[%s4314_s3 + $0xb0] sm:$0xff]  }
  0xcb   : > { %v3835_v23 = vrot.slane %v1595_v11, 4  ;;  %v3837_v13 = vrot.slane %v1596_v22, 4  ;;  %v2838_v10 = vunpack.i.h.bf16 %v2836_v0  ;;  %v2837_v52 = vunpack.i.l.bf16 %v2836_v0  ;;  %894 = vmatprep.mubr.bf16.mxu0 %v3141_v39  ;;  %vm2557_vm6 = vmpackc.low %vm3653_vm1, %vm3145_vm14 }
  0xcc   : > { %v2833_v54 = vunpack.i.h.bf16 %v2831_v2  ;;  %v2832_v16 = vunpack.i.l.bf16 %v2831_v2  ;;  %1311 = vmatpush1.bf16.msra.mxu1 %v1224_v57  ;;  %v1688_v33 = vsel %vm4364_vm5, %v1683_v5, %v3754_v12  ;;  %v3851_v17 = vsel %vm4365_vm0, %v3827_v25, %v3751_v30  ;;  %vm3879_vm5 = vmpackc.low %vm3706_vm9, %vm3145_vm14 }
  0xcd   : > { %v2846_v31 = vpop.permute.xlu1 %2845  ;;  %v2841_v32 = vpop.permute.xlu0 %2840  ;;  %v1049_v37 = vsel %vm1044_vm7, %v2838_v10, %v2837_v52  ;;  %v1064_v62 = vsel %vm1044_vm7, %v2837_v52, %v2838_v10  ;;  %vm4371_vm14 = vmmov %vm4365_vm0 }
  0xce   : > { %v2848_v55 = vunpack.i.h.bf16 %v2846_v31  ;;  %v2847_v56 = vunpack.i.l.bf16 %v2846_v31  ;;  %v1077_v57 = vsel %vm3583_vm8, %v1064_v62, 0.0  ;;  %v1624_v30 = vsel %vm1623_vm3, %v2832_v16, %v2833_v54  ;;  %vm4374_vm1 = vmmov %vm4365_vm0 }
  0xcf   : > { %v1644_v12 = vsel %vm1623_vm3, %v2833_v54, %v2832_v16  ;;  %v2843_v41 = vunpack.i.h.bf16 %v2841_v32  ;;  %v2561_v44 = vpack.c.bf16 %v1624_v30, %v3800_v38  ;;  %2467 = vmatmul.mubr.msk.bf16.gmra.mxu1 %vm810_vm11, %v2896_v53  ;;  %v2842_v47 = vunpack.i.l.bf16 %v2841_v32  ;;  %vm4370_vm3 = vmmov %vm4365_vm0 }
  0xd0   : > { %v2558_v43 = vpack.c.bf16 %v1644_v12, %v1692_v7  ;;  %v3872_v27 = vsel %vm1499_vm15, %v2847_v56, %v2848_v55  ;;  %v1524_v3 = vsel %vm1499_vm15, %v2848_v55, %v2847_v56  ;;  %v1078_v26 = vsel %vm3490_vm10, %v1049_v37, 0.0  ;;  %944 = vmatprep.mubr.bf16.mxu1 %v3141_v39  ;;  %v2898_v7 = vld [vmem:[%s4314_s3 + $0x38] sm:$0xff]   ;;  %vm4376_vm9 = vmmov %vm4365_vm0 }
  0xd1   : > { %v1541_v9 = vsel %vm3859_vm4, %v3872_v27, 0.0  ;;  %v2856_v48 = vpop.permute.xlu1 %2855  ;;  %v2851_v24 = vpop.permute.xlu0 %2850  ;;  %v1684_v42 = vsel %vm4370_vm3, %v3837_v13, %v1683_v5  ;;  %v1564_v45 = vsel %vm1563_vm2, %v2842_v47, %v2843_v41  ;;  %v1584_v46 = vsel %vm1563_vm2, %v2843_v41, %v2842_v47  ;;  %vm4375_vm2 = vmmov %vm4365_vm0 }
  0xd2   : > { %2559 = vmatprep.subr.msk.bf16.mxu0 %vm2557_vm6, %v2558_v43  ;;  %v2858_v50 = vunpack.i.h.bf16 %v2856_v48  ;;  %v2857_v51 = vunpack.i.l.bf16 %v2856_v48  ;;  %v2853_v63 = vunpack.i.h.bf16 %v2851_v24  ;;  %v2852_v1 = vunpack.i.l.bf16 %v2851_v24  ;;  %2463 = vmatmul.mubr.msk.bf16.gmra.mxu0 %vm810_vm11, %v2897_v34  ;;  %vm2509_vm6 = vmpackc.low %vm3583_vm8, %vm3583_vm8 }
  0xd3   : > { %2562 = vmatpush1.bf16.msk.msra.mxu0 %vm3879_vm5, %v2561_v44  ;;  %v1168_v20 = vsel %vm4371_vm14, %v1078_v26, %v1140_v58  ;;  %v1761_v38 = vpack.c.bf16 %v1688_v33, %v1684_v42  ;;  %v1593_v4 = vsel %vm3629_vm13, %v1564_v45, 0.0  ;;  %v1594_v6 = vsel %vm3615_vm12, %v1584_v46, 0.0  ;;  %vm3917_vm13 = vmand %vm3490_vm10, %vm3615_vm12  ;;  %904 = vmatprep.mubr.bf16.mxu0 %v3141_v39  ;;  %v2900_v46 = vld [vmem:[%s4314_s3 + $0x40] sm:$0xff]  }
  0xd4   : > { %v1048_v0 = vsel %vm1044_vm7, %v2858_v50, %v2853_v63  ;;  %v1063_v2 = vsel %vm1044_vm7, %v2853_v63, %v2858_v50  ;;  %v1675_v29 = vrot.slane %v1593_v4, 4  ;;  %v1676_v8 = vrot.slane %v1594_v6, 4  ;;  %vm2506_vm12 = vmpackc.low %vm3490_vm10, %vm3490_vm10  ;;  %v2901_v6 = vld [vmem:[%s4314_s3 + $0x80] sm:$0xff]  }
  0xd5   : > { %v1047_v58 = vsel %vm1044_vm7, %v2857_v51, %v2852_v1  ;;  %v1062_v36 = vsel %vm1044_vm7, %v2852_v1, %v2857_v51  ;;  %1846 = vmatprep.subr.bf16.mxu0 %v1761_v38  ;;  %v2866_v14 = vpop.permute.xlu1 %2865  ;;  %v2861_v18 = vpop.permute.xlu0 %2860  ;;  %v1223_v22 = vpack.c.bf16 %v3369_v60, %v1168_v20  ;;  %v1167_v10 = vsel %vm4374_vm1, %v1077_v57, %v1139_v59  ;;  %v2899_v59 = vld [vmem:[%s4314_s3 + $0x18] sm:$0xff]   ;;  %vm4377_vm5 = vmmov %vm4365_vm0 }
  0xd6   : > { %v2507_v5 = vpack.c.bf16 %v1048_v0, %v1047_v58  ;;  %v2510_v11 = vpack.c.bf16 %v1063_v2, %v1062_v36  ;;  %v1222_v52 = vpack.c.bf16 %v3374_v61, %v1167_v10  ;;  %v1682_v35 = vsel %vm4375_vm2, %v3835_v23, %v3827_v25  ;;  %vm4378_vm3 = vmmov %vm4365_vm0  ;;  %v2903_v0 = vld [vmem:[%s4314_s3 + $0x88] sm:$0xff]   ;;  %v2905_v2 = vld [vmem:[%s4314_s3 + $0x90] sm:$0xff]  }
  0xd7   : > { %v2868_v53 = vunpack.i.h.bf16 %v2866_v14  ;;  %v2867_v54 = vunpack.i.l.bf16 %v2866_v14  ;;  %1312 = vmatprep.subr.bf16.mxu1 %v1223_v22  ;;  %v1760_v16 = vpack.c.bf16 %v3851_v17, %v1682_v35  ;;  %v2863_v60 = vunpack.i.h.bf16 %v2861_v18  ;;  %2468 = vmatmul.mubr.msk.bf16.gmra.mxu1 %vm810_vm11, %v2898_v7  ;;  %vm2563_vm14 = vmpackc.low %vm3917_vm13, %vm3917_vm13  ;;  %v2906_v7 = vld [vmem:[%s4314_s3 + $0x58] sm:$0xff]   ;;  %v2909_v58 = vld [vmem:[%s4314_s3 + $0xa0] sm:$0xff]  }
  0xd8   : > { %v2862_v31 = vunpack.i.l.bf16 %v2861_v18  ;;  %v1542_v28 = vsel %vm3917_vm13, %v1524_v3, 0.0  ;;  %1313 = vmatpush1.bf16.msra.mxu1 %v1222_v52  ;;  %v1680_v32 = vsel %vm4376_vm9, %v1676_v8, %v3837_v13  ;;  %v1678_v30 = vsel %vm4377_vm5, %v1675_v29, %v3835_v23  ;;  %1334 = vmatprep.mubr.bf16.mxu1 %v3141_v39  ;;  %vm2566_vm1 = vmpackc.low %vm3859_vm4, %vm3859_vm4  ;;  %v2910_v36 = vld [vmem:[%s4314_s3 + $0x68] sm:$0xff]   ;;  %v2912_v18 = vld [vmem:[%s4314_s3 + $0x70] sm:$0xff]  }
  0xd9   : > { %v1503_v61 = vsel %vm1499_vm15, %v2867_v54, %v2868_v53  ;;  %v1523_v25 = vsel %vm1499_vm15, %v2868_v53, %v2867_v54  ;;  %v1704_v33 = vsel %vm4365_vm0, %v1542_v28, %v1676_v8  ;;  %v2876_v17 = vpop.permute.xlu1 %2875  ;;  %v2871_v37 = vpop.permute.xlu0 %2870  ;;  %1847 = vmatpush1.bf16.msra.mxu0 %v1760_v16  ;;  %2508 = vmatprep.subr.msk.bf16.mxu1 %vm2506_vm12, %v2507_v5  ;;  %v2908_v8 = vld [vmem:[%s4314_s3 + $0x60] sm:$0xff]   ;;  %v2911_v14 = vld [vmem:[%s4314_s3 + $0xa8] sm:$0xff]   ;;  %v2914_v5 = vld [vmem:[%s4314_s3 + $0x78] sm:$0xff]  }
  0xda   : > { %v1502_v62 = vsel %vm1499_vm15, %v2862_v31, %v2863_v60  ;;  %v1522_v55 = vsel %vm1499_vm15, %v2863_v60, %v2862_v31  ;;  %v1759_v56 = vpack.c.bf16 %v1680_v32, %v1704_v33  ;;  %v2878_v13 = vunpack.i.h.bf16 %v2876_v17  ;;  %2464 = vmatmul.mubr.msk.bf16.gmra.mxu0 %vm810_vm11, %v2899_v59 }
  0xdb   : > { %v2564_v57 = vpack.c.bf16 %v1523_v25, %v1522_v55  ;;  %v1703_v12 = vsel %vm4378_vm3, %v1541_v9, %v1675_v29  ;;  %v2877_v43 = vunpack.i.l.bf16 %v2876_v17  ;;  %v2873_v44 = vunpack.i.h.bf16 %v2871_v37  ;;  %1870 = vmatprep.mubr.bf16.mxu0 %v3141_v39  ;;  %v2907_v29 = vld [vmem:[%s4314_s3 + $0x98] sm:$0xff]  }
  0xdc   : > { %1848 = vmatprep.subr.bf16.mxu0 %v1759_v56  ;;  %v1758_v41 = vpack.c.bf16 %v1678_v30, %v1703_v12  ;;  %v2872_v3 = vunpack.i.l.bf16 %v2871_v37  ;;  %v2567_v23 = vpack.c.bf16 %v1503_v61, %v1502_v62  ;;  %2511 = vmatpush1.bf16.msk.msra.mxu1 %vm2509_vm6, %v2510_v11  ;;  %v2915_v11 = vld [vmem:[%s4314_s3 + $0xb8] sm:$0xff]  }
  0xdd   : > { %v2886_v27 = vpop.permute.xlu1 %2885  ;;  %v2881_v15 = vpop.permute.xlu0 %2880  ;;  %v1046_v34 = vsel %vm1044_vm7, %v2878_v13, %v2873_v44  ;;  %v1061_v9 = vsel %vm1044_vm7, %v2873_v44, %v2878_v13 }
  0xde   : > { %1849 = vmatpush1.bf16.msra.mxu0 %v1758_v41  ;;  %v1045_v47 = vsel %vm1044_vm7, %v2877_v43, %v2872_v3  ;;  %v1060_v48 = vsel %vm1044_vm7, %v2872_v3, %v2877_v43  ;;  %v2888_v42 = vunpack.i.h.bf16 %v2886_v27  ;;  %v2887_v50 = vunpack.i.l.bf16 %v2886_v27 }
  0xdf   : > { %v2513_v24 = vpack.c.bf16 %v1046_v34, %v1045_v47  ;;  %v2516_v26 = vpack.c.bf16 %v1061_v9, %v1060_v48  ;;  %2565 = vmatprep.subr.msk.bf16.mxu0 %vm2563_vm14, %v2564_v57  ;;  %v2883_v51 = vunpack.i.h.bf16 %v2881_v15  ;;  %v2882_v63 = vunpack.i.l.bf16 %v2881_v15 }
  0xe0   : > { %v1501_v1 = vsel %vm1499_vm15, %v2887_v50, %v2888_v42  ;;  %v1521_v45 = vsel %vm1499_vm15, %v2888_v42, %v2887_v50 }
  0xe1   : > { %2514 = vmatprep.subr.msk.bf16.mxu1 %vm2506_vm12, %v2513_v24  ;;  %v1500_v20 = vsel %vm1499_vm15, %v2882_v63, %v2883_v51  ;;  %v1520_v38 = vsel %vm1499_vm15, %v2883_v51, %v2882_v63 }
  0xe2   : > { %2568 = vmatpush1.bf16.msk.msra.mxu0 %vm2566_vm1, %v2567_v23  ;;  %2517 = vmatpush1.bf16.msk.msra.mxu1 %vm2509_vm6, %v2516_v26  ;;  %v2570_v19 = vpack.c.bf16 %v1521_v45, %v1520_v38  ;;  %v2573_v4 = vpack.c.bf16 %v1501_v1, %v1500_v20 }
  0xe4   : > { %2571 = vmatprep.subr.msk.bf16.mxu0 %vm2563_vm14, %v2570_v19 }
  0xe5   : > { %2518 = vmatmul.mubr.msk.bf16.vlgmr.msra.gmra.mxu1 %vm810_vm11, %v2900_v46 }
  0xe6   : > { %2574 = vmatpush1.bf16.msk.msra.mxu0 %vm2566_vm1, %v2573_v4  ;;  %1344 = vmatprep.mubr.bf16.mxu1 %v3141_v39 }
  0xe9   : > { %2575 = vmatmul.mubr.msk.bf16.vlgmr.msra.gmra.mxu0 %vm810_vm11, %v2901_v6 }
  0xea   : > { %1880 = vmatprep.mubr.bf16.mxu0 %v3141_v39  ;;  %v372_v47 = vpop.permute.xlu1 %371  ;;  %v367_v26 = vpop.permute.xlu0 %366 }
  0xed   : > { %2519 = vmatmul.mubr.msk.bf16.gmra.mxu1 %vm810_vm11, %v2902_v49 }
  0xee   : > { %1354 = vmatprep.mubr.bf16.mxu1 %v3141_v39  ;;  %v377_v38 = vpop.permute.xlu1 %376 }
  0xf1   : > { %2576 = vmatmul.mubr.msk.bf16.gmra.mxu0 %vm810_vm11, %v2903_v0 }
  0xf2   : > { %1890 = vmatprep.mubr.bf16.mxu0 %v3141_v39 }
  0xf5   : > { %2520 = vmatmul.mubr.msk.bf16.gmra.mxu1 %vm810_vm11, %v2904_v40 }
  0xf6   : > { %1364 = vmatprep.mubr.bf16.mxu1 %v3141_v39 }
  0xf9   : > { %2577 = vmatmul.mubr.msk.bf16.gmra.mxu0 %vm810_vm11, %v2905_v2 }
  0xfa   : > { %1900 = vmatprep.mubr.bf16.mxu0 %v3141_v39 }
  0xfd   : > { %2521 = vmatmul.mubr.msk.bf16.gmra.mxu1 %vm810_vm11, %v2906_v7 }
  0xfe   : > { %1374 = vmatprep.mubr.bf16.mxu1 %v3141_v39 }
 0x101   : > { %2578 = vmatmul.mubr.msk.bf16.gmra.mxu0 %vm810_vm11, %v2907_v29 }
 0x102   : > { %1910 = vmatprep.mubr.bf16.mxu0 %v3141_v39 }
 0x105   : > { %2522 = vmatmul.mubr.msk.bf16.gmra.mxu1 %vm810_vm11, %v2908_v8 }
 0x106   : > { %1384 = vmatprep.mubr.bf16.mxu1 %v3141_v39 }
 0x109   : > { %2579 = vmatmul.mubr.msk.bf16.gmra.mxu0 %vm810_vm11, %v2909_v58 }
 0x10a   : > { %1920 = vmatprep.mubr.bf16.mxu0 %v3141_v39 }
 0x10d   : > { %2523 = vmatmul.mubr.msk.bf16.gmra.mxu1 %vm810_vm11, %v2910_v36 }
 0x10e   : > { %1394 = vmatprep.mubr.bf16.mxu1 %v3141_v39 }
 0x111   : > { %2580 = vmatmul.mubr.msk.bf16.gmra.mxu0 %vm810_vm11, %v2911_v14 }
 0x112   : > { %1930 = vmatprep.mubr.bf16.mxu0 %v3141_v39 }
 0x115   : > { %2524 = vmatmul.mubr.msk.bf16.gmra.mxu1 %vm810_vm11, %v2912_v18  ;;  %v382_v18 = vpop.permute.xlu0 %381 }
 0x116   : > { %1404 = vmatprep.mubr.bf16.mxu1 %v3141_v39 }
 0x119   : > { %2581 = vmatmul.mubr.msk.bf16.gmra.mxu0 %vm810_vm11, %v2913_v21 }
 0x11a   : > { %1940 = vmatprep.mubr.bf16.mxu0 %v3141_v39 }
 0x11d   : > { %2525 = vmatmul.mubr.msk.bf16.gmra.mxu1 %vm810_vm11, %v2914_v5 }
 0x121   : > { %2582 = vmatmul.mubr.msk.bf16.gmra.mxu0 %vm810_vm11, %v2915_v11 }
 0x17f   : > { %v4092_v22 = vpop.f32.mrf.mxu1  ;;  %v876_v10 = vpop.f32.mrf.mxu0 }
 0x180   : > { %v955_v42 = vadd.f32 %v876_v10, %v367_v26 }
 0x181   : > { %v4094_v52 = vpop.f32.mrf.mxu1  ;;  %v878_v35 = vpop.f32.mrf.mxu0 }
 0x182   : > { %v956_v63 = vadd.f32 %v878_v35, %v367_v26 }
 0x183   : > { %v4096_v53 = vpop.f32.mrf.mxu1  ;;  %v880_v54 = vpop.f32.mrf.mxu0 }
 0x184   : > { %v957_v1 = vadd.f32 %v880_v54, %v372_v47 }
 0x185   : > { %v4098_v16 = vpop.f32.mrf.mxu1  ;;  %v882_v39 = vpop.f32.mrf.mxu0 }
 0x186   : > { %v958_v4 = vadd.f32 %v882_v39, %v372_v47  ;;  %v387_v39 = vpop.permute.xlu1 %386 }
 0x187   : > { %v4100_v60 = vpop.f32.mrf.mxu1 }
 0x189   : > { %v4102_v31 = vpop.f32.mrf.mxu1 }
 0x18a   : > { %v886_v28 = vpop.f32.mrf.mxu0 }
 0x18b   : > { %v4104_v59 = vpop.f32.mrf.mxu1  ;;  %v959_v2 = vadd.f32 %v886_v28, %v377_v38 }
 0x18c   : > { %v888_v61 = vpop.f32.mrf.mxu0 }
 0x18d   : > { %v4106_v25 = vpop.f32.mrf.mxu1  ;;  %v960_v29 = vadd.f32 %v888_v61, %v377_v38 }
 0x18e   : > { %v890_v32 = vpop.f32.mrf.mxu0 }
 0x18f   : > { %v4108_v33 = vpop.f32.mrf.mxu1  ;;  %v961_v5 = vadd.f32 %v890_v32, %v382_v18  ;;  %v392_v32 = vpop.permute.xlu0 %391 }
 0x190   : > { %v4110_v17 = vpop.f32.mrf.mxu0 }
 0x191   : > { %v4112_v37 = vpop.f32.mrf.mxu1 }
 0x192   : > { %v896_v62 = vpop.f32.mrf.mxu0 }
 0x193   : > { %v4114_v55 = vpop.f32.mrf.mxu1 }
 0x194   : > { %v4116_v56 = vpop.f32.mrf.mxu0 }
 0x195   : > { %v4118_v13 = vpop.f32.mrf.mxu1 }
 0x196   : > { %v4120_v57 = vpop.f32.mrf.mxu0 }
 0x197   : > { %v4122_v30 = vpop.f32.mrf.mxu1 }
 0x198   : > { %v4124_v12 = vpop.f32.mrf.mxu0 }
 0x199   : > { %v4126_v41 = vpop.f32.mrf.mxu1 }
 0x19a   : > { %v4128_v43 = vpop.f32.mrf.mxu0 }
 0x19b   : > { %v4132_v3 = vpop.f32.mrf.mxu1 }
 0x19c   : > { %v4130_v44 = vpop.f32.mrf.mxu0 }
 0x19d   : > { %v4136_v27 = vpop.f32.mrf.mxu1 }
 0x19e   : > { %v4134_v23 = vpop.f32.mrf.mxu0 }
 0x1a0   : > { %v4138_v34 = vpop.f32.mrf.mxu0 }
 0x1a5   : > { %v1336_v15 = vpop.f32.mrf.mxu1 }
 0x1a6   : > { %v1415_v45 = vadd.f32 %v1336_v15, %v955_v42  ;;  %v963_v42 = vadd.f32 %v896_v62, %v387_v39 }
 0x1a7   : > { %v1338_v9 = vpop.f32.mrf.mxu1 }
 0x1a8   : > { %v1416_v19 = vadd.f32 %v1338_v9, %v956_v63 }
 0x1a9   : > { %v1340_v48 = vpop.f32.mrf.mxu1  ;;  %v1872_v24 = vpop.f32.mrf.mxu0 }
 0x1aa   : > { %v1417_v6 = vadd.f32 %v1340_v48, %v957_v1  ;;  %v1951_v49 = vadd.f32 %v1872_v24, %v1415_v45 }
 0x1ab   : > { %v1342_v50 = vpop.f32.mrf.mxu1  ;;  %v1874_v51 = vpop.f32.mrf.mxu0 }
 0x1ac   : > { %v1952_v7 = vadd.f32 %v1874_v51, %v1416_v19  ;;  %v1418_v8 = vadd.f32 %v1342_v50, %v958_v4  ;;  %v2583_v11 = vmul.f32 -1.442695, %v1951_v49 }
 0x1ad   : > { %v1346_v46 = vpop.f32.mrf.mxu1  ;;  %v1876_v20 = vpop.f32.mrf.mxu0 }
 0x1ae   : > { %v1953_v58 = vadd.f32 %v1876_v20, %v1417_v6  ;;  %v1419_v21 = vadd.f32 %v1346_v46, %v959_v2  ;;  %v2584_v9 = vmul.f32 -1.442695, %v1952_v7  ;;  %2916 = vpow2.f32 %v2583_v11  ;;  %v397_v7 = vpop.permute.xlu1 %396 }
 0x1af   : > { %v1348_v0 = vpop.f32.mrf.mxu1  ;;  %v1878_v40 = vpop.f32.mrf.mxu0  ;;  %v964_v20 = vadd.f32 %v4116_v56, %v387_v39  ;;  %v965_v6 = vadd.f32 %v4120_v57, %v392_v32 }
 0x1b0   : > { %v1420_v10 = vadd.f32 %v1348_v0, %v960_v29  ;;  %v1954_v35 = vadd.f32 %v1878_v40, %v1418_v8  ;;  %v2585_v48 = vmul.f32 -1.442695, %v1953_v58  ;;  %2918 = vpow2.f32 %v2584_v9 }
 0x1b1   : > { %v1350_v36 = vpop.f32.mrf.mxu1  ;;  %v1882_v14 = vpop.f32.mrf.mxu0  ;;  %v962_v8 = vadd.f32 %v4110_v17, %v382_v18  ;;  %v966_v58 = vadd.f32 %v4124_v12, %v392_v32 }
 0x1b2   : > { %v1955_v47 = vadd.f32 %v1882_v14, %v1419_v21  ;;  %v1421_v24 = vadd.f32 %v1350_v36, %v961_v5  ;;  %v2586_v50 = vmul.f32 -1.442695, %v1954_v35  ;;  %2920 = vpow2.f32 %v2585_v48  ;;  %v402_v12 = vpop.permute.xlu0 %401 }
 0x1b3   : > { %v1352_v54 = vpop.f32.mrf.mxu1  ;;  %v1884_v15 = vpop.f32.mrf.mxu0  ;;  %v967_v21 = vadd.f32 %v4128_v43, %v397_v7 }
 0x1b4   : > { %v1956_v28 = vadd.f32 %v1884_v15, %v1420_v10  ;;  %v2587_v45 = vmul.f32 -1.442695, %v1955_v47  ;;  %2922 = vpow2.f32 %v2586_v50  ;;  %v1422_v11 = vadd.f32 %v1352_v54, %v962_v8 }
 0x1b5   : > { %v1356_v26 = vpop.f32.mrf.mxu1  ;;  %v1886_v61 = vpop.f32.mrf.mxu0 }
 0x1b6   : > { %v1957_v51 = vadd.f32 %v1886_v61, %v1421_v24  ;;  %v1423_v46 = vadd.f32 %v1356_v26, %v963_v42  ;;  %v2588_v38 = vmul.f32 -1.442695, %v1956_v28  ;;  %2924 = vpow2.f32 %v2587_v45 }
 0x1b7   : > { %v1358_v63 = vpop.f32.mrf.mxu1  ;;  %v1888_v1 = vpop.f32.mrf.mxu0  ;;  %v968_v24 = vadd.f32 %v4130_v44, %v397_v7 }
 0x1b8   : > { %v2589_v62 = vmul.f32 -1.442695, %v1957_v51  ;;  %v1424_v0 = vadd.f32 %v1358_v63, %v964_v20  ;;  %2926 = vpow2.f32 %v2588_v38  ;;  %v1958_v47 = vadd.f32 %v1888_v1, %v1422_v11 }
 0x1b9   : > { %v1360_v19 = vpop.f32.mrf.mxu1  ;;  %v1892_v4 = vpop.f32.mrf.mxu0  ;;  %v969_v20 = vadd.f32 %v4134_v23, %v402_v12 }
 0x1ba   : > { %v1959_v49 = vadd.f32 %v1892_v4, %v1423_v46  ;;  %v1425_v29 = vadd.f32 %v1360_v19, %v965_v6  ;;  %2928 = vpow2.f32 %v2589_v62  ;;  %v2590_v63 = vmul.f32 -1.442695, %v1958_v47  ;;  %v407_v46 = vpop.permute.xlu1 %406  ;;  %v412_v62 = vpop.permute.xlu0 %411 }
 0x1bb   : > { %v1362_v40 = vpop.f32.mrf.mxu1  ;;  %v1894_v2 = vpop.f32.mrf.mxu0 }
 0x1bc   : > { %v1960_v56 = vadd.f32 %v1894_v2, %v1424_v0  ;;  %v2591_v57 = vmul.f32 -1.442695, %v1959_v49  ;;  %v1426_v10 = vadd.f32 %v1362_v40, %v966_v58  ;;  %v2917_v42 = vpop.eup %2916  ;;  %v970_v0 = vadd.f32 %v4138_v34, %v402_v12 }
 0x1bd   : > { %v1366_v36 = vpop.f32.mrf.mxu1  ;;  %v1896_v14 = vpop.f32.mrf.mxu0  ;;  %v2071_v19 = vadd.f32 1.0, %v2917_v42 }
 0x1be   : > { %v1961_v5 = vadd.f32 %v1896_v14, %v1425_v29  ;;  %v2592_v39 = vmul.f32 -1.442695, %v1960_v56  ;;  %v1427_v9 = vadd.f32 %v1366_v36, %v967_v21  ;;  %2930 = vpow2.f32 %v2591_v57  ;;  %v2919_v51 = vpop.eup %2918 }
 0x1bf   : > { %v1368_v35 = vpop.f32.mrf.mxu1  ;;  %v1898_v15 = vpop.f32.mrf.mxu0  ;;  %v2072_v40 = vadd.f32 1.0, %v2919_v51  ;;  %v971_v29 = vadd.f32 %v4092_v22, %v407_v46  ;;  %v972_v57 = vadd.f32 %v4094_v52, %v407_v46  ;;  %v974_v52 = vadd.f32 %v4098_v16, %v412_v62 }
 0x1c0   : > { %v1962_v48 = vadd.f32 %v1898_v15, %v1426_v10  ;;  %v2593_v28 = vmul.f32 -1.442695, %v1961_v5  ;;  %2932 = vpow2.f32 %v2592_v39  ;;  %v1428_v54 = vadd.f32 %v1368_v35, %v968_v24  ;;  %v2921_v1 = vpop.eup %2920  ;;  %v417_v22 = vpop.permute.xlu1 %416 }
 0x1c1   : > { %v1370_v17 = vpop.f32.mrf.mxu1  ;;  %v1902_v18 = vpop.f32.mrf.mxu0  ;;  %v2073_v8 = vadd.f32 1.0, %v2921_v1  ;;  %v973_v15 = vadd.f32 %v4096_v53, %v412_v62 }
 0x1c2   : > { %v1963_v26 = vadd.f32 %v1902_v18, %v1427_v9  ;;  %v2594_v50 = vmul.f32 -1.442695, %v1962_v48  ;;  %2934 = vpow2.f32 %v2593_v28  ;;  %v2923_v49 = vpop.eup %2922  ;;  %v1429_v2 = vadd.f32 %v1370_v17, %v969_v20 }
 0x1c3   : > { %v1372_v43 = vpop.f32.mrf.mxu1  ;;  %v1904_v61 = vpop.f32.mrf.mxu0  ;;  %v2074_v5 = vadd.f32 1.0, %v2923_v49 }
 0x1c4   : > { %v2595_v38 = vmul.f32 -1.442695, %v1963_v26  ;;  %v1964_v44 = vadd.f32 %v1904_v61, %v1428_v54  ;;  %2936 = vpow2.f32 %v2594_v50  ;;  %v2925_v7 = vpop.eup %2924  ;;  %v1430_v36 = vadd.f32 %v1372_v43, %v970_v0  ;;  %v422_v49 = vpop.permute.xlu0 %421 }
 0x1c5   : > { %v1376_v32 = vpop.f32.mrf.mxu1  ;;  %v1906_v45 = vpop.f32.mrf.mxu0  ;;  %2938 = vpow2.f32 %v2590_v63  ;;  %v2075_v39 = vadd.f32 1.0, %v2925_v7  ;;  %v975_v54 = vadd.f32 %v4100_v60, %v417_v22  ;;  %v976_v60 = vadd.f32 %v4102_v31, %v417_v22 }
 0x1c6   : > { %v2927_v56 = vpop.eup %2926  ;;  %2940 = vpow2.f32 %v2595_v38  ;;  %v2596_v14 = vmul.f32 -1.442695, %v1964_v44  ;;  %v1965_v21 = vadd.f32 %v1906_v45, %v1429_v2  ;;  %v1431_v34 = vadd.f32 %v1376_v32, %v971_v29  ;;  %v427_v62 = vpop.permute.xlu1 %426 }
 0x1c7   : > { %v1378_v4 = vpop.f32.mrf.mxu1  ;;  %v1908_v6 = vpop.f32.mrf.mxu0  ;;  %2942 = vrcp.f32 %v2071_v19  ;;  %v2076_v47 = vadd.f32 1.0, %v2927_v56  ;;  %v980_v22 = vadd.f32 %v4112_v37, %v427_v62  ;;  %v978_v37 = vadd.f32 %v4106_v25, %v422_v49 }
 0x1c8   : > { %v2929_v35 = vpop.eup %2928  ;;  %2944 = vrcp.f32 %v2072_v40  ;;  %v1966_v9 = vadd.f32 %v1908_v6, %v1430_v36  ;;  %v1432_v48 = vadd.f32 %v1378_v4, %v972_v57  ;;  %v2597_v24 = vmul.f32 -1.442695, %v1965_v21 }
 0x1c9   : > { %v1380_v58 = vpop.f32.mrf.mxu1  ;;  %v1912_v23 = vpop.f32.mrf.mxu0  ;;  %2946 = vrcp.f32 %v2073_v8  ;;  %v2077_v26 = vadd.f32 1.0, %v2929_v35 }
 0x1ca   : > { %v1967_v17 = vadd.f32 %v1912_v23, %v1431_v34  ;;  %2948 = vpow2.f32 %v2596_v14  ;;  %v1433_v43 = vadd.f32 %v1380_v58, %v973_v15  ;;  %v2598_v50 = vmul.f32 -1.442695, %v1966_v9 }
 0x1cb   : > { %v1382_v11 = vpop.f32.mrf.mxu1  ;;  %v1914_v10 = vpop.f32.mrf.mxu0  ;;  %2950 = vrcp.f32 %v2074_v5  ;;  %v979_v14 = vadd.f32 %v4108_v33, %v427_v62  ;;  %v977_v34 = vadd.f32 %v4104_v59, %v422_v49 }
 0x1cc   : > { %v2931_v28 = vpop.eup %2930  ;;  %v1968_v61 = vadd.f32 %v1914_v10, %v1432_v48  ;;  %2952 = vrcp.f32 %v2075_v39  ;;  %v2599_v63 = vmul.f32 -1.442695, %v1967_v17  ;;  %v1434_v32 = vadd.f32 %v1382_v11, %v974_v52  ;;  %v432_v11 = vpop.permute.xlu0 %431 }
 0x1cd   : > { %v1386_v18 = vpop.f32.mrf.mxu1  ;;  %v1916_v12 = vpop.f32.mrf.mxu0  ;;  %2954 = vrcp.f32 %v2076_v47  ;;  %v2119_v46 = vadd.f32 1.0, %v2931_v28  ;;  %v981_v59 = vadd.f32 %v4114_v55, %v432_v11 }
 0x1ce   : > { %v2933_v51 = vpop.eup %2932  ;;  %v1969_v45 = vadd.f32 %v1916_v12, %v1433_v43  ;;  %2956 = vpow2.f32 %v2597_v24  ;;  %v2600_v38 = vmul.f32 -1.442695, %v1968_v61  ;;  %v1435_v44 = vadd.f32 %v1386_v18, %v975_v54  ;;  %v437_v61 = vpop.permute.xlu1 %436 }
 0x1cf   : > { %v1388_v53 = vpop.f32.mrf.mxu1  ;;  %v1918_v42 = vpop.f32.mrf.mxu0  ;;  %2958 = vrcp.f32 %v2077_v26  ;;  %v2120_v0 = vadd.f32 1.0, %v2933_v51 }
 0x1d0   : > { %v2935_v20 = vpop.eup %2934  ;;  %v1970_v19 = vadd.f32 %v1918_v42, %v1434_v32  ;;  %2960 = vpow2.f32 %v2598_v50  ;;  %v2601_v2 = vmul.f32 -1.442695, %v1969_v45  ;;  %v1436_v56 = vadd.f32 %v1388_v53, %v976_v60 }
 0x1d1   : > { %v1390_v1 = vpop.f32.mrf.mxu1  ;;  %v1922_v16 = vpop.f32.mrf.mxu0  ;;  %2962 = vpow2.f32 %v2599_v63  ;;  %v2121_v23 = vadd.f32 1.0, %v2935_v20  ;;  %v982_v50 = vadd.f32 %v4118_v13, %v432_v11 }
 0x1d2   : > { %v2937_v40 = vpop.eup %2936  ;;  %v1971_v7 = vadd.f32 %v1922_v16, %v1435_v44  ;;  %2964 = vrcp.f32 %v2119_v46  ;;  %v2602_v31 = vmul.f32 -1.442695, %v1970_v19  ;;  %v1437_v18 = vadd.f32 %v1390_v1, %v977_v34 }
 0x1d3   : > { %v4153_v4 = vpop.f32.mrf.mxu1  ;;  %v1924_v6 = vpop.f32.mrf.mxu0  ;;  %2966 = vpow2.f32 %v2600_v38  ;;  %v2122_v10 = vadd.f32 1.0, %v2937_v40  ;;  %v983_v46 = vadd.f32 %v4122_v30, %v437_v61 }
 0x1d4   : > { %v4156_v58 = vpop.eup %2938  ;;  %2968 = vrcp.f32 %v2120_v0  ;;  %v1972_v35 = vadd.f32 %v1924_v6, %v1436_v56  ;;  %v2603_v39 = vmul.f32 -1.442695, %v1971_v7  ;;  %v1438_v16 = vadd.f32 %v4153_v4, %v978_v37  ;;  %v442_v6 = vpop.permute.xlu0 %441  ;;  %v2200_v37 = vld [vmem:[%s4188_s11 + $0x8] sm:$0xff] }
 0x1d5   : > { %v1396_v29 = vpop.f32.mrf.mxu1  ;;  %v1926_v8 = vpop.f32.mrf.mxu0  ;;  %2970 = vpow2.f32 %v2601_v2  ;;  %v984_v0 = vadd.f32 %v4126_v41, %v437_v61  ;;  %v986_v34 = vadd.f32 %v4136_v27, %v442_v6 }
 0x1d6   : > { %v2941_v36 = vpop.eup %2940  ;;  %v1439_v9 = vadd.f32 %v1396_v29, %v979_v14  ;;  %2972 = vrcp.f32 %v2121_v23  ;;  %v2604_v53 = vmul.f32 -1.442695, %v1972_v35  ;;  %v1973_v42 = vadd.f32 %v1926_v8, %v1437_v18 }
 0x1d7   : > { %v1398_v21 = vpop.f32.mrf.mxu1  ;;  %v1928_v57 = vpop.f32.mrf.mxu0  ;;  %v2123_v17 = vadd.f32 1.0, %v2941_v36  ;;  %v985_v23 = vadd.f32 %v4132_v3, %v442_v6  ;;  %v2203_v6 = vld [vmem:[%s4188_s11 + $0x20] sm:$0xff] }
 0x1d8   : > { %v4159_v5 = vpop.eup %2942  ;;  %2974 = vpow2.f32 %v2602_v31  ;;  %v1440_v52 = vadd.f32 %v1398_v21, %v980_v22  ;;  %v2605_v60 = vmul.f32 -1.442695, %v1973_v42  ;;  %v1974_v49 = vadd.f32 %v1928_v57, %v1438_v16 }
 0x1d9   : > { %v4162_v15 = vpop.eup %2944  ;;  %v1400_v33 = vpop.f32.mrf.mxu1  ;;  %2976 = vrcp.f32 %v2122_v10 }
 0x1da   : > { %v1932_v47 = vpop.f32.mrf.mxu0  ;;  %v4165_v48 = vpop.eup %2946  ;;  %2978 = vpow2.f32 %v2603_v39  ;;  %v1441_v51 = vadd.f32 %v1400_v33, %v981_v59  ;;  %v2606_v21 = vmul.f32 -1.442695, %v1974_v49 }
 0x1db   : > { %v2949_v12 = vpop.eup %2948  ;;  %v1975_v24 = vadd.f32 %v1932_v47, %v1439_v9  ;;  %v1402_v28 = vpop.f32.mrf.mxu1  ;;  %2980 = vrcp.f32 %v2123_v17  ;;  %v2078_v17 = vadd.f32 1.0, %v4156_v58 }
 0x1dc   : > { %v1934_v26 = vpop.f32.mrf.mxu0  ;;  %v4168_v43 = vpop.eup %2950  ;;  %v2124_v1 = vadd.f32 1.0, %v2949_v12  ;;  %v1442_v20 = vadd.f32 %v1402_v28, %v982_v50 }
 0x1dd   : > { %v4171_v54 = vpop.eup %2952  ;;  %v1976_v55 = vadd.f32 %v1934_v26, %v1440_v52  ;;  %v1406_v63 = vpop.f32.mrf.mxu1  ;;  %2982 = vtanh.f32 %v1975_v24  ;;  %v2199_v52 = vld [vmem:[%s4188_s11] sm:$0xff] }
 0x1de   : > { %v1936_v32 = vpop.f32.mrf.mxu0  ;;  %v4174_v45 = vpop.eup %2954  ;;  %2984 = vpow2.f32 %v2604_v53  ;;  %v1443_v40 = vadd.f32 %v1406_v63, %v983_v46  ;;  %v2202_v46 = vld [vmem:[%s4188_s11 + $0x18] sm:$0xff] }
 0x1df   : > { %v2957_v25 = vpop.eup %2956  ;;  %v1977_v38 = vadd.f32 %v1936_v32, %v1441_v51  ;;  %v1408_v44 = vpop.f32.mrf.mxu1  ;;  %2986 = vtanh.f32 %v1976_v55  ;;  %v2201_v51 = vld [vmem:[%s4188_s11 + $0x10] sm:$0xff] }
 0x1e0   : > { %v1938_v19 = vpop.f32.mrf.mxu0  ;;  %v4178_v13 = vpop.eup %2958  ;;  %2988 = vrcp.f32 %v2124_v1  ;;  %v2125_v29 = vadd.f32 1.0, %v2957_v25  ;;  %v1444_v56 = vadd.f32 %v1408_v44, %v984_v0 }
 0x1e1   : > { %v2961_v62 = vpop.eup %2960  ;;  %v1978_v4 = vadd.f32 %v1938_v19, %v1442_v20  ;;  %v1410_v2 = vpop.f32.mrf.mxu1  ;;  %2990 = vtanh.f32 %v1977_v38 }
 0x1e2   : > { %v1942_v7 = vpop.f32.mrf.mxu0  ;;  %v2963_v30 = vpop.eup %2962  ;;  %2992 = vpow2.f32 %v2605_v60  ;;  %v1445_v11 = vadd.f32 %v1410_v2, %v985_v23  ;;  %v2126_v3 = vadd.f32 1.0, %v2961_v62  ;;  %v2204_v2 = vld [vmem:[%s4188_s11 + $0x28] sm:$0xff] }
 0x1e3   : > { %v2965_v8 = vpop.eup %2964  ;;  %v1979_v36 = vadd.f32 %v1942_v7, %v1443_v40  ;;  %v1412_v41 = vpop.f32.mrf.mxu1  ;;  %2994 = vtanh.f32 %v1978_v4  ;;  %v2167_v26 = vadd.f32 1.0, %v2963_v30 }
 0x1e4   : > { %v1944_v14 = vpop.f32.mrf.mxu0  ;;  %v2967_v31 = vpop.eup %2966  ;;  %2996 = vrcp.f32 %v2125_v29  ;;  %v1446_v9 = vadd.f32 %v1412_v41, %v986_v34  ;;  %v2207_v61 = vmul.f32 %v2965_v8, %v2199_v52 }
 0x1e5   : > { %v2969_v57 = vpop.eup %2968  ;;  %v1980_v10 = vadd.f32 %v1944_v14, %v1444_v56  ;;  %2998 = vtanh.f32 %v1979_v36  ;;  %v2168_v50 = vadd.f32 1.0, %v2967_v31  ;;  %v2205_v56 = vld [vmem:[%s4188_s11 + $0x30] sm:$0xff] }
 0x1e6   : > { %v1946_v35 = vpop.f32.mrf.mxu0  ;;  %v2971_v22 = vpop.eup %2970  ;;  %3000 = vpow2.f32 %v2606_v21  ;;  %v2208_v32 = vmul.f32 %v2969_v57, %v2200_v37  ;;  %v2206_v57 = vld [vmem:[%s4188_s11 + $0x38] sm:$0xff] }
 0x1e7   : > { %v2973_v39 = vpop.eup %2972  ;;  %v1981_v33 = vadd.f32 %v1946_v35, %v1445_v11  ;;  %3002 = vtanh.f32 %v1980_v10  ;;  %v2169_v25 = vadd.f32 1.0, %v2971_v22 }
 0x1e8   : > { %v1948_v27 = vpop.f32.mrf.mxu0  ;;  %v2975_v47 = vpop.eup %2974  ;;  %3004 = vrcp.f32 %v2126_v3  ;;  %v2209_v38 = vmul.f32 %v2973_v39, %v2201_v51 }
 0x1e9   : > { %v2977_v18 = vpop.eup %2976  ;;  %v1982_v12 = vadd.f32 %v1948_v27, %v1446_v9  ;;  %3006 = vtanh.f32 %v1981_v33 }
 0x1ea   : > { %v2979_v59 = vpop.eup %2978  ;;  %3008 = vrcp.f32 %v2078_v17  ;;  %v2210_v62 = vmul.f32 %v2977_v18, %v2202_v46 }
 0x1eb   : > { %v2981_v24 = vpop.eup %2980  ;;  %3010 = vtanh.f32 %v1982_v12  ;;  %v2171_v4 = vadd.f32 1.0, %v2979_v59 }
 0x1ec   : > { %v2983_v28 = vpop.eup %2982  ;;  %3012 = vrcp.f32 %v2167_v26  ;;  %v2211_v30 = vmul.f32 %v2981_v24, %v2203_v6 }
 0x1ed   : > { %v2985_v58 = vpop.eup %2984  ;;  %v2215_v53 = vmul.f32 %v2983_v28, %v4159_v5 }
 0x1ee   : > { %v2987_v42 = vpop.eup %2986  ;;  %v2172_v23 = vadd.f32 1.0, %v2985_v58 }
 0x1ef   : > { %v2989_v55 = vpop.eup %2988  ;;  %v2223_v63 = vadd.f32 %v2215_v53, %v2207_v61  ;;  %v2216_v1 = vmul.f32 %v2987_v42, %v4162_v15  ;;  %v2170_v15 = vadd.f32 1.0, %v2975_v47 }
 0x1f0   : > { %v2991_v16 = vpop.eup %2990  ;;  %v2212_v14 = vmul.f32 %v2989_v55, %v2204_v2 }
 0x1f1   : > { %v2993_v20 = vpop.eup %2992  ;;  %3014 = vtanh.f32 %v2223_v63  ;;  %2247 = vst [vmem:[%s4203_s10] sm:$0xff] %v2223_v63  ;;  %v2224_v5 = vadd.f32 %v2216_v1, %v2208_v32  ;;  %v2217_v44 = vmul.f32 %v2991_v16, %v4165_v48 }
 0x1f2   : > { %v2995_v19 = vpop.eup %2994  ;;  %3016 = vrcp.f32 %v2168_v50  ;;  %v2173_v41 = vadd.f32 1.0, %v2993_v20 }
 0x1f3   : > { %v2997_v60 = vpop.eup %2996  ;;  %3018 = vtanh.f32 %v2224_v5  ;;  %2248 = vst [vmem:[%s4203_s10 + $0x8] sm:$0xff] %v2224_v5  ;;  %v2225_v49 = vadd.f32 %v2217_v44, %v2209_v38  ;;  %v2218_v0 = vmul.f32 %v2995_v19, %v4168_v43 }
 0x1f4   : > { %v2999_v40 = vpop.eup %2998  ;;  %3020 = vrcp.f32 %v2169_v25  ;;  %v2213_v11 = vmul.f32 %v2997_v60, %v2205_v56 }
 0x1f5   : > { %v3001_v7 = vpop.eup %3000  ;;  %3022 = vtanh.f32 %v2225_v49  ;;  %2249 = vst [vmem:[%s4203_s10 + $0x10] sm:$0xff] %v2225_v49  ;;  %v2226_v48 = vadd.f32 %v2218_v0, %v2210_v62  ;;  %v2219_v29 = vmul.f32 %v2999_v40, %v4171_v54 }
 0x1f6   : > { %v3003_v8 = vpop.eup %3002  ;;  %3024 = vrcp.f32 %v2170_v15  ;;  %v2174_v22 = vadd.f32 1.0, %v3001_v7 }
 0x1f7   : > { %v3005_v36 = vpop.eup %3004  ;;  %3026 = vtanh.f32 %v2226_v48  ;;  %2250 = vst [vmem:[%s4203_s10 + $0x18] sm:$0xff] %v2226_v48  ;;  %v2227_v43 = vadd.f32 %v2219_v29, %v2211_v30  ;;  %v2220_v31 = vmul.f32 %v3003_v8, %v4174_v45 }
 0x1f8   : > { %v3007_v21 = vpop.eup %3006  ;;  %3028 = vrcp.f32 %v2171_v4  ;;  %v2214_v3 = vmul.f32 %v3005_v36, %v2206_v57 }
 0x1f9   : > { %v3009_v54 = vpop.eup %3008  ;;  %3030 = vtanh.f32 %v2227_v43  ;;  %2251 = vst [vmem:[%s4203_s10 + $0x20] sm:$0xff] %v2227_v43  ;;  %v2228_v34 = vadd.f32 %v2220_v31, %v2212_v14  ;;  %v2221_v10 = vmul.f32 %v3007_v21, %v4178_v13 }
 0x1fa   : > { %v3011_v35 = vpop.eup %3010  ;;  %3032 = vrcp.f32 %v2172_v23 }
 0x1fb   : > { %3034 = vtanh.f32 %v2228_v34  ;;  %2252 = vst [vmem:[%s4203_s10 + $0x28] sm:$0xff] %v2228_v34  ;;  %v2229_v45 = vadd.f32 %v2221_v10, %v2213_v11  ;;  %v2222_v39 = vmul.f32 %v3011_v35, %v3009_v54  ;;  %v3013_v9 = vpop.eup %3012 }
 0x1fc   : > { %3036 = vrcp.f32 %v2173_v41 }
 0x1fd   : > { %3038 = vtanh.f32 %v2229_v45  ;;  %2253 = vst [vmem:[%s4203_s10 + $0x30] sm:$0xff] %v2229_v45  ;;  %v2230_v33 = vadd.f32 %v2222_v39, %v2214_v3 }
 0x1fe   : > { %v3015_v13 = vpop.eup %3014  ;;  %3040 = vrcp.f32 %v2174_v22 }
 0x1ff   : > { %v3017_v27 = vpop.eup %3016  ;;  %v2239_v47 = vmul.f32 %v3015_v13, %v3013_v9  ;;  %3042 = vtanh.f32 %v2230_v33  ;;  %2254 = vst [vmem:[%s4203_s10 + $0x38] sm:$0xff] %v2230_v33 }
 0x200   : > { %v3019_v17 = vpop.eup %3018 }
 0x201   : > { %3057 = shalt.err (!%p3054_p3)
}
 0x202   : > { %s3058_s11 = scalar_lea.hbm %s4228_s17, 1024  ;;  %s3062_s16 = scalar_lea.hbm %s4317_s6, 2048 }
 0x203   : > { %p3059_p4 = scmp.ne.s32.totalorder %s4228_s17, %s3058_s11  ;;  %p3063_p9 = scmp.lt.s32.totalorder %s4228_s17, %s4317_s6 }
 0x204   : > { %p3064_p10 = scmp.lt.s32.totalorder %s3062_s16, %s3058_s11 }
 0x205   : > { %p3060_p7 = pnand %p3059_p4, %p3222_p5 }
 0x206   : > { %p3065_p11 = por %p3064_p10, %p3063_p9 }
 0x207   : > { %p3061_p8 = pneg %p3060_p7 }
 0x209   : > { %p3066_p12 = pnand %p3065_p11, %p3061_p8 }
 0x20b   : > { %3069 = shalt.err (!%p3066_p12)
}
 0x20c   : > { %s3147_s20 = smov 256   ;;  %v3021_v18 = vpop.eup %3020  ;;  %s278_s13 = scalar_lea.vmem [#allocation3], %s2420_s9  ;;  %v2240_v12 = vmul.f32 %v3019_v17, %v3017_v27 }
 0x20d   : > { %2635 = dma.vmem_to_hbm [thread:$0]  (%p3222_p5), %s4230_s14, 1024, %s4228_s17, %s2269_s19, %s3147_s20, %s3147_s20, %s3136_s18   ;;  %v3023_v59 = vpop.eup %3022 }
 0x20e   : > { %2255 = vst [vmem:[%s278_s13] sm:$0xff] %v2239_v47  ;;  %v3025_v52 = vpop.eup %3024  ;;  %2256 = vst [vmem:[%s278_s13 + $0x8] sm:$0xff] %v2240_v12  ;;  %v2241_v24 = vmul.f32 %v3023_v59, %v3021_v18  ;;  %s2282_s9 = sshll.u32 %s278_s13, 4  ;;  %s4379_s14 = sshll.u32 %s3205_s25, 10  ;;  %s4268_s9 = int_to_ptr.vmem [resolvable:$true] %s2282_s9 }
 0x20f   : > { %v3027_v28 = vpop.eup %3026  ;;  %s4266_s28 = scalar_lea.hbm %s4316_s5, %s4379_s14  ;;  %s2264_s29 = scalar_lea.sflag [#allocation4], %s4192_s12 }
 0x210   : > { %v3029_v26 = vpop.eup %3028  ;;  %2257 = vst [vmem:[%s278_s13 + $0x10] sm:$0xff] %v2241_v24  ;;  %v2242_v37 = vmul.f32 %v3027_v28, %v3025_v52  ;;  %s3070_s11 = scalar_lea.vmem %s4268_s9, 1024  ;;  %s3148_s10 = smov [#allocation3]  }
 0x211   : > { %v3031_v58 = vpop.eup %3030  ;;  %p3071_p13 = scmp.ne.s32.totalorder %s4268_s9, %s3070_s11  ;;  %s3074_s15 = sshll.u32 %s3148_s10, 4  ;;  %s3075_s15 = int_to_ptr.vmem [resolvable:$false] %s3074_s15 }
 0x212   : > { %v3033_v61 = vpop.eup %3032  ;;  %2258 = vst [vmem:[%s278_s13 + $0x18] sm:$0xff] %v2242_v37  ;;  %v2243_v53 = vmul.f32 %v3031_v58, %v3029_v26  ;;  %s3076_s25 = scalar_lea.vmem %s3075_s15, 2048  ;;  %p3077_p2 = scmp.lt.s32.totalorder %s4268_s9, %s3075_s15 }
 0x213   : > { %v3035_v42 = vpop.eup %3034  ;;  %p3072_p0 = pnand %p3071_p13, %p3222_p5  ;;  %p3078_p3 = scmp.lt.s32.totalorder %s3076_s25, %s3070_s11 }
 0x214   : > { %v3037_v50 = vpop.eup %3036  ;;  %2259 = vst [vmem:[%s278_s13 + $0x20] sm:$0xff] %v2243_v53  ;;  %v2244_v51 = vmul.f32 %v3035_v42, %v3033_v61 }
 0x215   : > { %v3039_v55 = vpop.eup %3038  ;;  %p3073_p1 = pneg %p3072_p0  ;;  %p3079_p4 = por %p3078_p3, %p3077_p2 }
 0x216   : > { %v3041_v63 = vpop.eup %3040  ;;  %2260 = vst [vmem:[%s278_s13 + $0x28] sm:$0xff] %v2244_v51  ;;  %v2245_v32 = vmul.f32 %v3039_v55, %v3037_v50 }
 0x217   : > { %v3043_v1 = vpop.eup %3042  ;;  %p3080_p7 = pnand %p3079_p4, %p3073_p1 }
 0x218   : > { %2261 = vst [vmem:[%s278_s13 + $0x30] sm:$0xff] %v2245_v32  ;;  %v2246_v16 = vmul.f32 %v3043_v1, %v3041_v63 }
 0x21a   : > { %2262 = vst [vmem:[%s278_s13 + $0x38] sm:$0xff] %v2246_v16 }
 0x21b   : > { %3083 = shalt.err (!%p3080_p7)
}
 0x21c   : > { %s3084_s16 = scalar_lea.hbm %s4266_s28, 1024  ;;  %s3088_s13 = scalar_lea.hbm %s4316_s5, 2048 }
 0x21d   : > { %p3085_p8 = scmp.ne.s32.totalorder %s4266_s28, %s3084_s16  ;;  %p3089_p11 = scmp.lt.s32.totalorder %s4266_s28, %s4316_s5 }
 0x21e   : > { %p3090_p12 = scmp.lt.s32.totalorder %s3088_s13, %s3084_s16 }
 0x21f   : > { %p3086_p9 = pnand %p3085_p8, %p3222_p5 }
 0x220   : > { %p3091_p13 = por %p3090_p12, %p3089_p11 }
 0x221   : > { %p3087_p10 = pneg %p3086_p9 }
 0x223   : > { %p3092_p0 = pnand %p3091_p13, %p3087_p10 }
 0x225   : > { %3095 = shalt.err (!%p3092_p0)
}
 0x226   : > { %2634 = dma.vmem_to_hbm [thread:$0]  (%p3222_p5), %s4268_s9, 1024, %s4266_s28, %s2264_s29, %s3147_s20, %s3147_s20, %s3136_s18  }
 0x227 PF: > { %p2645_p1 = scmp.ge.s32.totalorder %s3134_s24, 2  ;;  %s2313_s19 = sand.u32 1, %s3122_s21  }
 0x228   : > { %s2314_s11 = scalar_lea.sflag [#allocation4], %s2313_s19 }
 0x229   : > { %p2639_p2 = pnand %p2645_p1, %p3226_p6 }
 0x22b   : > { %p2640_p3 = pneg %p2639_p2 }
 0x22d   : > { %3113 = dma.done.wait (%p2640_p3), %s2314_s11, 1024  }
 0x22e   : > { %3115 = vsyncadd (%p2640_p3), %s2314_s11, 4294966272  ;;  %s2323_s10 = scalar_lea.sflag [#allocation6], %s2313_s19 }
 0x22f   : > { %3117 = dma.done.wait (%p2640_p3), %s2323_s10, 1024  }
 0x230   : > { %3119 = vsyncadd (%p2640_p3), %s2323_s10, 4294966272  ;;  %p20_p5 = scmp.ge.s32.totalorder %s3209_s27, 4   ;;  %s4380_s21 = smov %s3126_s22 }
 0x231   : > { %s4381_s22 = smov %s3130_s23  ;;  %s4382_s23 = smov %s3220_s30 }
 0x232   : > { %s4383_s24 = smov %s3209_s27  ;;  %22 = sbr.rel (!%p20_p5) target bundleno = 5 (0x5), region = 100 }
 0x237   :  { %2328 = vsyncpa [#allocation4], 1 }
 0x238   :  { %2330 = vsyncpa [#allocation4 + $0x1], 1 }
 0x239   :  { %2331 = vsyncpa [#allocation6], 1 }
 0x23a   :  { %2333 = vsyncpa [#allocation6 + $0x1], 1 }

</bundles_post_ra>
